<compile_context>
chip_gen: v6e
topology: v6e:2x2x1
jax: 0.10.0
libtpu: 0.0.40
codegen_flags: <defaults>
</compile_context>

<pallas_src>
import functools

import jax
import jax.numpy as jnp
from jax import lax
from jax.experimental import pallas as pl
from jax.experimental.pallas import tpu as pltpu

IN_DIM = 1000
HID = 512
NUM_CLASSES = 3
S_SCALE = 30.0   # cosface s
M_MARGIN = 0.4   # cosface m
EPS = 1e-12      # F.normalize clamp (on the norm, not the squared norm)


def _round_up(n, m):
    return ((n + m - 1) // m) * m


def _spoof_kernel(x_ref, labels_ref, w1_ref, b1_ref, w2t_ref,
                  feat_ref, losssum_ref, *, tb, b_actual):
    """One batch tile per grid step.

    x_ref:       (tb, 1000) f32
    labels_ref:  (tb, 1)    int32
    w1_ref:      (1000, 512) f32  (resident; pre-transposed from PyTorch (512,1000))
    b1_ref:      (1, 512)   f32   (resident)
    w2t_ref:     (512, 3)   f32   (resident; pre-transposed from PyTorch (3,512))
    feat_ref:    (tb, 3)    f32   cosine logits ("features")
    losssum_ref: (1, 1)     f32   per-tile sum of L_i over valid rows
    """
    # ---- Linear(1000 -> 512) + ReLU (MXU + VPU) ----
    h = jnp.dot(x_ref[...], w1_ref[...], preferred_element_type=jnp.float32)
    h = jnp.maximum(h + b1_ref[...], 0.0)                              # (tb, 512)

    # ---- fold both L2-normalizations into post-matmul scales ----
    # 1 / max(||h||, eps) == rsqrt(max(||h||^2, eps^2))  (rsqrt -> EUP slot)
    inv_h = lax.rsqrt(jnp.maximum(jnp.sum(h * h, axis=-1, keepdims=True),
                                  EPS * EPS))                          # (tb, 1)
    w = w2t_ref[...]                                                   # (512, 3)
    inv_w = lax.rsqrt(jnp.maximum(jnp.sum(w * w, axis=0, keepdims=True),
                                  EPS * EPS))                          # (1, 3)

    wf = jnp.dot(h, w, preferred_element_type=jnp.float32) * inv_h * inv_w
    feat_ref[...] = wf                                                 # (tb, 3)

    # ---- one-hot built in-kernel from int32 labels ----
    classes = lax.broadcasted_iota(jnp.int32, (tb, NUM_CLASSES), 1)
    onehot = (labels_ref[...] == classes).astype(jnp.float32)          # (tb, 3)

    # ---- cosface loss terms (canonical, unstabilized exp like the source) ----
    diag = jnp.sum(wf * onehot, axis=-1, keepdims=True)                # (tb, 1)
    numerator = S_SCALE * (diag - M_MARGIN)                            # (tb, 1)
    excl = jnp.sum(jnp.exp(S_SCALE * wf) * (1.0 - onehot),
                   axis=-1, keepdims=True)                             # (tb, 1)
    L = numerator - jnp.log(jnp.exp(numerator) + excl)                 # (tb, 1)

    # mask batch-padding rows; emit per-tile partial sum (mean finished outside)
    rows = pl.program_id(0) * tb + lax.broadcasted_iota(jnp.int32, (tb, 1), 0)
    valid = (rows < b_actual).astype(jnp.float32)
    losssum_ref[...] = jnp.sum(L * valid, axis=0, keepdims=True)       # (1, 1)


@functools.partial(jax.jit, static_argnames=("positive",))
def _forward_jit(x, labels, params, positive):
    w1t = params["w1t"]   # (1000, 512) kernel layout (pre-transposed once)
    b1 = params["b1"]     # (1, 512)
    w2t = params["w2t"]   # (512, 3)

    B = x.shape[0]
    tb = min(256, _round_up(B, 8))          # multiple of 8; capped for VMEM
    b_pad = _round_up(B, tb)
    n_tiles = b_pad // tb

    if b_pad != B:
        x = jnp.pad(x, ((0, b_pad - B), (0, 0)))
        labels = jnp.pad(labels, ((0, b_pad - B),))
    labels2 = labels.astype(jnp.int32).reshape(b_pad, 1)

    kernel = functools.partial(_spoof_kernel, tb=tb, b_actual=B)

    feats, loss_partials = pl.pallas_call(
        kernel,
        out_shape=(
            jax.ShapeDtypeStruct((b_pad, NUM_CLASSES), jnp.float32),
            jax.ShapeDtypeStruct((n_tiles, 1), jnp.float32),
        ),
        grid_spec=pltpu.PrefetchScalarGridSpec(
            num_scalar_prefetch=0,
            grid=(n_tiles,),
            in_specs=[
                pl.BlockSpec((tb, IN_DIM), lambda i: (i, 0)),        # x tile
                pl.BlockSpec((tb, 1), lambda i: (i, 0)),             # labels tile
                pl.BlockSpec((IN_DIM, HID), lambda i: (0, 0)),       # w1 resident
                pl.BlockSpec((1, HID), lambda i: (0, 0)),            # b1 resident
                pl.BlockSpec((HID, NUM_CLASSES), lambda i: (0, 0)),  # w2t resident
            ],
            out_specs=[
                pl.BlockSpec((tb, NUM_CLASSES), lambda i: (i, 0)),   # features
                pl.BlockSpec((1, 1), lambda i: (i, 0)),              # loss partials
            ],
        ),
        compiler_params=pltpu.CompilerParams(
            dimension_semantics=("parallel",),       # megacore-shardable (v7x)
            vmem_limit_bytes=32 * 1024 * 1024,
        ),
    )(x, labels2, w1t, b1, w2t)

    feats = feats[:B]
    if positive:
        loss = -jnp.sum(loss_partials) / B
        return feats, loss
    return feats


def spoof_classifier_acc_forward(x, labels, positive, params):
    """Mirrors spoof_classifier_acc.forward(x, labels, positive)."""
    return _forward_jit(x, labels, params, bool(positive))


def prepare_params(w1, b1, w2):
    """One-time conversion from PyTorch (out, in) layout to kernel layout."""
    return {
        "w1t": jnp.asarray(w1, jnp.float32).T,          # (1000, 512)
        "b1": jnp.asarray(b1, jnp.float32).reshape(1, HID),
        "w2t": jnp.asarray(w2, jnp.float32).T,          # (512, 3)
    }


def init_params(key):
    """Deterministic init matching the PyTorch module's parameter shapes
    (nn.Linear default U(-1/sqrt(fan_in), 1/sqrt(fan_in)))."""
    k1, k2, k3 = jax.random.split(key, 3)
    bound1 = 1.0 / (IN_DIM ** 0.5)
    w1 = jax.random.uniform(k1, (HID, IN_DIM), jnp.float32, -bound1, bound1)
    b1 = jax.random.uniform(k2, (HID,), jnp.float32, -bound1, bound1)
    bound2 = 1.0 / (HID ** 0.5)
    w2 = jax.random.uniform(k3, (NUM_CLASSES, HID), jnp.float32, -bound2, bound2)
    return prepare_params(w1, b1, w2)


def _reference(x, labels, params):
    """Pure-JAX reference (high precision) for a correctness smoke test."""
    hp = jax.lax.Precision.HIGHEST
    h = jnp.maximum(jnp.dot(x, params["w1t"], precision=hp) + params["b1"], 0.0)
    hn = h / jnp.maximum(jnp.linalg.norm(h, axis=1, keepdims=True), EPS)
    w = params["w2t"]
    wn = w / jnp.maximum(jnp.linalg.norm(w, axis=0, keepdims=True), EPS)
    wf = jnp.dot(hn, wn, precision=hp)
    onehot = jax.nn.one_hot(labels, NUM_CLASSES, dtype=jnp.float32)
    diag = jnp.sum(wf * onehot, axis=-1)
    num = S_SCALE * (diag - M_MARGIN)
    excl = jnp.sum(jnp.exp(S_SCALE * wf) * (1.0 - onehot), axis=-1)
    L = num - jnp.log(jnp.exp(num) + excl)
    return wf, -jnp.mean(L)


if __name__ == "__main__":
    key = jax.random.PRNGKey(0)
    kx, kl, kp = jax.random.split(key, 3)

    B = 8
    x = jax.random.normal(kx, (B, IN_DIM), dtype=jnp.float32)
    labels = jax.random.randint(kl, (B,), 0, NUM_CLASSES)
    params = init_params(kp)

    # positive=True branch: (features, result)
    feats_pos, loss = spoof_classifier_acc_forward(x, labels, True, params)
    # positive=False branch: features only
    feats_neg = spoof_classifier_acc_forward(x, labels, False, params)

    jax.block_until_ready((feats_pos, loss, feats_neg))
    assert feats_pos.shape == (B, NUM_CLASSES)
    assert feats_neg.shape == (B, NUM_CLASSES)
    assert loss.shape == ()

    ref_feats, ref_loss = _reference(x, labels, params)
    assert jnp.all(jnp.isfinite(feats_pos)) and jnp.isfinite(loss)
    assert jnp.allclose(feats_pos, ref_feats, rtol=2e-3, atol=2e-3)
    assert jnp.allclose(feats_neg, ref_feats, rtol=2e-3, atol=2e-3)
    assert jnp.allclose(loss, ref_loss, rtol=2e-3, atol=2e-3)

    print("KERNEL_OK")
</pallas_src>

<mosaic_0001>
module attributes {stable_mosaic.version = 11 : i64} {
  func.func @_spoof_kernel(%arg0: i32, %arg1: memref<8x1000xf32, #tpu.memory_space<vmem>>, %arg2: memref<8x1xi32, #tpu.memory_space<vmem>>, %arg3: memref<1000x512xf32, #tpu.memory_space<vmem>>, %arg4: memref<1x512xf32, #tpu.memory_space<vmem>>, %arg5: memref<512x3xf32, #tpu.memory_space<vmem>>, %arg6: memref<8x3xf32, #tpu.memory_space<vmem>>, %arg7: memref<1x1xf32, #tpu.memory_space<vmem>>) attributes {dimension_semantics = [#tpu.dimension_semantics<parallel>], iteration_bounds = array<i64: 1>, scalar_prefetch = 0 : i64, scratch_operands = 0 : i64, tpu.core_type = #tpu.core_type<tc>, window_params = [{transform_indices = @transform_0, window_bounds = array<i64: 8, 1000>}, {transform_indices = @transform_1, window_bounds = array<i64: 8, 1>}, {pipeline_mode = #tpu.pipeline_mode<synchronous>, transform_indices = @transform_2, window_bounds = array<i64: 1000, 512>}, {pipeline_mode = #tpu.pipeline_mode<synchronous>, transform_indices = @transform_3, window_bounds = array<i64: 1, 512>}, {pipeline_mode = #tpu.pipeline_mode<synchronous>, transform_indices = @transform_4, window_bounds = array<i64: 512, 3>}, {transform_indices = @transform_5, window_bounds = array<i64: 8, 3>}, {transform_indices = @transform_6, window_bounds = array<i64: 1, 1>}]} {
    %c0 = arith.constant 0 : index
    %c0_0 = arith.constant 0 : index
    %0 = vector.load %arg1[%c0, %c0_0] : memref<8x1000xf32, #tpu.memory_space<vmem>>, vector<8x1000xf32>
    %c0_1 = arith.constant 0 : index
    %c0_2 = arith.constant 0 : index
    %1 = vector.load %arg3[%c0_1, %c0_2] : memref<1000x512xf32, #tpu.memory_space<vmem>>, vector<1000x512xf32>
    %cst = arith.constant dense<0.000000e+00> : vector<8x512xf32>
    %2 = tpu.matmul %0, %1, %cst {dimension_numbers = #tpu.dot_dimension_numbers<[1], [0], [0], [1], [0, 0, 1, 1], [], []>} : vector<8x1000xf32>, vector<1000x512xf32>, vector<8x512xf32> -> vector<8x512xf32>
    %c0_3 = arith.constant 0 : index
    %c0_4 = arith.constant 0 : index
    %3 = vector.load %arg4[%c0_3, %c0_4] : memref<1x512xf32, #tpu.memory_space<vmem>>, vector<1x512xf32>
    %4 = vector.broadcast %3 : vector<1x512xf32> to vector<8x512xf32>
    %5 = arith.addf %2, %4 : vector<8x512xf32>
    %cst_5 = arith.constant 0.000000e+00 : f32
    %6 = vector.broadcast %cst_5 : f32 to vector<8x512xf32>
    %7 = arith.maximumf %5, %6 : vector<8x512xf32>
    %8 = arith.mulf %7, %7 : vector<8x512xf32>
    %cst_6 = arith.constant dense<0.000000e+00> : vector<8xf32>
    %9 = vector.multi_reduction <add>, %8, %cst_6 [1] : vector<8x512xf32> to vector<8xf32>
    %10 = vector.shape_cast %9 : vector<8xf32> to vector<8x1xf32>
    %cst_7 = arith.constant 1.000000e-24 : f32
    %11 = vector.broadcast %cst_7 : f32 to vector<8x1xf32>
    %12 = arith.maximumf %10, %11 : vector<8x1xf32>
    %13 = math.rsqrt %12 : vector<8x1xf32>
    %c0_8 = arith.constant 0 : index
    %c0_9 = arith.constant 0 : index
    %14 = vector.load %arg5[%c0_8, %c0_9] : memref<512x3xf32, #tpu.memory_space<vmem>>, vector<512x3xf32>
    %15 = arith.mulf %14, %14 : vector<512x3xf32>
    %cst_10 = arith.constant dense<0.000000e+00> : vector<3xf32>
    %16 = vector.multi_reduction <add>, %15, %cst_10 [0] : vector<512x3xf32> to vector<3xf32>
    %17 = vector.shape_cast %16 : vector<3xf32> to vector<1x3xf32>
    %cst_11 = arith.constant 1.000000e-24 : f32
    %18 = vector.broadcast %cst_11 : f32 to vector<1x3xf32>
    %19 = arith.maximumf %17, %18 : vector<1x3xf32>
    %20 = math.rsqrt %19 : vector<1x3xf32>
    %cst_12 = arith.constant dense<0.000000e+00> : vector<8x3xf32>
    %21 = tpu.matmul %7, %14, %cst_12 {dimension_numbers = #tpu.dot_dimension_numbers<[1], [0], [0], [1], [0, 0, 1, 1], [], []>} : vector<8x512xf32>, vector<512x3xf32>, vector<8x3xf32> -> vector<8x3xf32>
    %22 = vector.broadcast %13 : vector<8x1xf32> to vector<8x3xf32>
    %23 = arith.mulf %21, %22 : vector<8x3xf32>
    %24 = vector.broadcast %20 : vector<1x3xf32> to vector<8x3xf32>
    %25 = arith.mulf %23, %24 : vector<8x3xf32>
    %c0_13 = arith.constant 0 : index
    %c0_14 = arith.constant 0 : index
    %26 = vector.load %arg6[%c0_13, %c0_14] : memref<8x3xf32, #tpu.memory_space<vmem>>, vector<8x3xf32>
    tpu.vector_store %arg6[%c0_13, %c0_14], %25 {strides = array<i32>} : memref<8x3xf32, #tpu.memory_space<vmem>>, vector<8x3xf32>,
    %27 = tpu.iota {dimensions = array<i32: 1>} : vector<8x3xi32>
    %c0_15 = arith.constant 0 : index
    %c0_16 = arith.constant 0 : index
    %28 = vector.load %arg2[%c0_15, %c0_16] : memref<8x1xi32, #tpu.memory_space<vmem>>, vector<8x1xi32>
    %29 = vector.broadcast %28 : vector<8x1xi32> to vector<8x3xi32>
    %30 = arith.cmpi eq, %29, %27 : vector<8x3xi32>
    %31 = arith.extui %30 : vector<8x3xi1> to vector<8x3xi32>
    %32 = arith.sitofp %31 : vector<8x3xi32> to vector<8x3xf32>
    %33 = arith.mulf %25, %32 : vector<8x3xf32>
    %cst_17 = arith.constant dense<0.000000e+00> : vector<8xf32>
    %34 = vector.multi_reduction <add>, %33, %cst_17 [1] : vector<8x3xf32> to vector<8xf32>
    %35 = vector.shape_cast %34 : vector<8xf32> to vector<8x1xf32>
    %cst_18 = arith.constant 4.000000e-01 : f32
    %36 = vector.broadcast %cst_18 : f32 to vector<8x1xf32>
    %37 = arith.subf %35, %36 : vector<8x1xf32>
    %cst_19 = arith.constant 3.000000e+01 : f32
    %38 = vector.broadcast %cst_19 : f32 to vector<8x1xf32>
    %39 = arith.mulf %38, %37 : vector<8x1xf32>
    %cst_20 = arith.constant 3.000000e+01 : f32
    %40 = vector.broadcast %cst_20 : f32 to vector<8x3xf32>
    %41 = arith.mulf %40, %25 : vector<8x3xf32>
    %42 = math.exp %41 : vector<8x3xf32>
    %cst_21 = arith.constant 1.000000e+00 : f32
    %43 = vector.broadcast %cst_21 : f32 to vector<8x3xf32>
    %44 = arith.subf %43, %32 : vector<8x3xf32>
    %45 = arith.mulf %42, %44 : vector<8x3xf32>
    %cst_22 = arith.constant dense<0.000000e+00> : vector<8xf32>
    %46 = vector.multi_reduction <add>, %45, %cst_22 [1] : vector<8x3xf32> to vector<8xf32>
    %47 = vector.shape_cast %46 : vector<8xf32> to vector<8x1xf32>
    %48 = math.exp %39 : vector<8x1xf32>
    %49 = arith.addf %48, %47 : vector<8x1xf32>
    %50 = math.log %49 : vector<8x1xf32>
    %51 = arith.subf %39, %50 : vector<8x1xf32>
    %c8_i32 = arith.constant 8 : i32
    %52 = arith.muli %arg0, %c8_i32 : i32
    %53 = tpu.iota {dimensions = array<i32: 0>} : vector<8x1xi32>
    %54 = vector.broadcast %52 : i32 to vector<8x1xi32>
    %55 = arith.addi %54, %53 : vector<8x1xi32>
    %c8_i32_23 = arith.constant 8 : i32
    %56 = vector.broadcast %c8_i32_23 : i32 to vector<8x1xi32>
    %57 = arith.cmpi slt, %55, %56 : vector<8x1xi32>
    %58 = arith.extui %57 : vector<8x1xi1> to vector<8x1xi32>
    %59 = arith.sitofp %58 : vector<8x1xi32> to vector<8x1xf32>
    %60 = arith.mulf %51, %59 : vector<8x1xf32>
    %cst_24 = arith.constant dense<0.000000e+00> : vector<1xf32>
    %61 = vector.multi_reduction <add>, %60, %cst_24 [0] : vector<8x1xf32> to vector<1xf32>
    %62 = vector.shape_cast %61 : vector<1xf32> to vector<1x1xf32>
    %c0_25 = arith.constant 0 : index
    %c0_26 = arith.constant 0 : index
    %63 = vector.load %arg7[%c0_25, %c0_26] : memref<1x1xf32, #tpu.memory_space<vmem>>, vector<1x1xf32>
    tpu.vector_store %arg7[%c0_25, %c0_26], %62 {strides = array<i32>} : memref<1x1xf32, #tpu.memory_space<vmem>>, vector<1x1xf32>,
    return
  }
  func.func @transform_0(%arg0: i32) -> (i32, i32) {
    %c0_i32 = arith.constant 0 : i32
    %c0_i32_0 = arith.constant 0 : i32
    return %arg0, %c0_i32 : i32, i32
  }
  func.func @transform_1(%arg0: i32) -> (i32, i32) {
    %c0_i32 = arith.constant 0 : i32
    %c0_i32_0 = arith.constant 0 : i32
    return %arg0, %c0_i32 : i32, i32
  }
  func.func @transform_2(%arg0: i32) -> (i32, i32) {
    %c0_i32 = arith.constant 0 : i32
    %c0_i32_0 = arith.constant 0 : i32
    %c0_i32_1 = arith.constant 0 : i32
    return %c0_i32, %c0_i32_0 : i32, i32
  }
  func.func @transform_3(%arg0: i32) -> (i32, i32) {
    %c0_i32 = arith.constant 0 : i32
    %c0_i32_0 = arith.constant 0 : i32
    %c0_i32_1 = arith.constant 0 : i32
    return %c0_i32, %c0_i32_0 : i32, i32
  }
  func.func @transform_4(%arg0: i32) -> (i32, i32) {
    %c0_i32 = arith.constant 0 : i32
    %c0_i32_0 = arith.constant 0 : i32
    %c0_i32_1 = arith.constant 0 : i32
    return %c0_i32, %c0_i32_0 : i32, i32
  }
  func.func @transform_5(%arg0: i32) -> (i32, i32) {
    %c0_i32 = arith.constant 0 : i32
    %c0_i32_0 = arith.constant 0 : i32
    return %arg0, %c0_i32 : i32, i32
  }
  func.func @transform_6(%arg0: i32) -> (i32, i32) {
    %c0_i32 = arith.constant 0 : i32
    %c0_i32_0 = arith.constant 0 : i32
    return %arg0, %c0_i32 : i32, i32
  }
}

</mosaic_0001>

<bundles_post_ra>
// kernel: _forward_jit.1
= control target key start
LH: loop header
LB: loop body
LE: loop exit
PB: predicated region body
PF: predicated region fallthrough
CT: control target
= control target key end

     0   :  { %12 = vsyncpa [#allocation3], 0  ;;  %s2429_s0 = inlined_call_operand.hbm [shape: f32[8,1000], index: 0, kind: input, shape index: {}]   ;;  %s2430_s1 = inlined_call_operand.vmem [shape: s32[8,1], index: 1, kind: input, shape index: {}]   ;;  %s2431_s2 = inlined_call_operand.hbm [shape: f32[1000,512], index: 2, kind: input, shape index: {}]   ;;  %s2432_s3 = inlined_call_operand.hbm [shape: f32[1,512], index: 3, kind: input, shape index: {}]   ;;  %s2433_s4 = inlined_call_operand.vmem [shape: f32[512,3], index: 4, kind: input, shape index: {}]   ;;  %s2434_s5 = inlined_call_operand.vmem [shape: f32[8,3], index: 5, kind: output, shape index: {0}]   ;;  %s2435_s6 = inlined_call_operand.hbm [shape: f32[1,1], index: 6, kind: output, shape index: {1}]  }
   0x1   :  { %13 = vsyncpa [#allocation6], 0 }
   0x2   :  { %14 = vsyncpa [#allocation4], 0  ;;  %s1836_s21 = smov [#allocation5]  }
   0x3   :  { %s32_s22 = sshll.u32 %s1836_s21, 4  ;;  %s33_s22 = int_to_ptr.vmem [resolvable:$true] %s32_s22 }
   0x4   :  { %s1758_s23 = scalar_lea.vmem %s33_s22, 64000  ;;  %p1763_p1 = scmp.lt.s32.totalorder %s33_s22, %s33_s22 }
   0x5   :  { %p1759_p0 = scmp.ne.s32.totalorder %s33_s22, %s1758_s23  ;;  %p1764_p2 = scmp.lt.s32.totalorder %s1758_s23, %s1758_s23 }
   0x7   :  { %p1765_p3 = por %p1764_p2, %p1763_p1 }
   0x9   :  { %p1766_p4 = pnand %p1765_p3, %p1759_p0 }
   0xb   :  { %1769 = shalt.err (!%p1766_p4)
}
   0xc   :  { %s1837_s24 = smov 512   ;;  %s1838_s25 = smov 32  }
   0xd   :  { %38 = dma.hbm_to_vmem [thread:$0]  %s2431_s2, 64000, %s33_s22, [#allocation6], %s1837_s24, %s1837_s24, %s1838_s25  }
   0xe   :  { %s1839_s28 = smov [#allocation2]   ;;  %s1840_s30 = smov [#allocation7]  }
   0xf   :  { %s21_s29 = sshll.u32 %s1839_s28, 4  ;;  %s45_s7 = sshll.u32 %s1840_s30, 4  ;;  %s22_s29 = int_to_ptr.vmem [resolvable:$true] %s21_s29  ;;  %s46_s7 = int_to_ptr.vmem [resolvable:$true] %s45_s7 }
  0x10   :  { %s1778_s8 = scalar_lea.vmem %s22_s29, 1024  ;;  %p1783_p6 = scmp.lt.s32.totalorder %s22_s29, %s22_s29 }
  0x11   :  { %p1779_p5 = scmp.ne.s32.totalorder %s22_s29, %s1778_s8  ;;  %p1784_p7 = scmp.lt.s32.totalorder %s1778_s8, %s1778_s8 }
  0x13   :  { %p1785_p8 = por %p1784_p7, %p1783_p6 }
  0x15   :  { %p1786_p9 = pnand %p1785_p8, %p1779_p5 }
  0x17   :  { %1789 = shalt.err (!%p1786_p9)
}
  0x18   :  { %24 = dma.hbm_to_vmem [thread:$0]  %s2429_s0, 1024, %s22_s29, [#allocation3]  }
  0x19   :  { %s1798_s11 = scalar_lea.vmem %s46_s7, 64  ;;  %p1803_p11 = scmp.lt.s32.totalorder %s46_s7, %s46_s7 }
  0x1a   :  { %p1799_p10 = scmp.ne.s32.totalorder %s46_s7, %s1798_s11  ;;  %p1804_p12 = scmp.lt.s32.totalorder %s1798_s11, %s1798_s11 }
  0x1c   :  { %p1805_p13 = por %p1804_p12, %p1803_p11 }
  0x1e   :  { %p1806_p0 = pnand %p1805_p13, %p1799_p10 }
  0x20   :  { %1809 = shalt.err (!%p1806_p0)
}
  0x21   :  { %48 = dma.hbm_to_vmem [thread:$0]  %s2432_s3, 64, %s46_s7, [#allocation6]  }
  0x22   :  { %1830 = dma.done.wait [#allocation3], 1024  }
  0x23   :  { %1831 = vsyncadd [#allocation3], 4294966272 }
  0x24   :  { %1832 = dma.done.wait [#allocation6], 64064  }
  0x25   :  { %1833 = vsyncadd [#allocation6], 4294903232  ;;  %v129_v0 = vld [vmem:[#allocation5 + $0x1e8] sm:$0xff]  ;;  %v128_v2 = vld [vmem:[#allocation5 + $0x1e0] sm:$0xff]  ;;  %vm590_vm0 = vcmask 850944   ;;  %vm1305_vm1 = vcmask 23552  }
  0x26   :  { %v257_v1 = vld [vmem:[#allocation5 + $0x5e8] sm:$0xff]  ;;  %594 = vmatprep.subr.mxu0 %v129_v0  ;;  %v256_v3 = vld [vmem:[#allocation5 + $0x5e0] sm:$0xff]  ;;  %vm1628_vm3 = vcmask 0  }
  0x27   :  { %665 = vmatprep.subr.mxu1 %v257_v1  ;;  %v125_v4 = vld [vmem:[#allocation5 + $0x1c8] sm:$0xff]  ;;  %595 = vmatpush1.msra.mxu0 %v128_v2  ;;  %v124_v6 = vld [vmem:[#allocation5 + $0x1c0] sm:$0xff] }
  0x28   :  { %v253_v5 = vld [vmem:[#allocation5 + $0x5c8] sm:$0xff]  ;;  %666 = vmatpush1.msra.mxu1 %v256_v3  ;;  %v252_v7 = vld [vmem:[#allocation5 + $0x5c0] sm:$0xff]  ;;  %596 = vmatprep.subr.mxu0 %v125_v4 }
  0x29   :  { %v121_v8 = vld [vmem:[#allocation5 + $0x1a8] sm:$0xff]  ;;  %667 = vmatprep.subr.mxu1 %v253_v5  ;;  %v120_v10 = vld [vmem:[#allocation5 + $0x1a0] sm:$0xff]  ;;  %597 = vmatpush1.msra.mxu0 %v124_v6 }
  0x2a   :  { %v249_v9 = vld [vmem:[#allocation5 + $0x5a8] sm:$0xff]  ;;  %v248_v11 = vld [vmem:[#allocation5 + $0x5a0] sm:$0xff]  ;;  %668 = vmatpush1.msra.mxu1 %v252_v7  ;;  %598 = vmatprep.subr.mxu0 %v121_v8 }
  0x2b   :  { %v117_v12 = vld [vmem:[#allocation5 + $0x188] sm:$0xff]  ;;  %669 = vmatprep.subr.mxu1 %v249_v9  ;;  %v116_v14 = vld [vmem:[#allocation5 + $0x180] sm:$0xff]  ;;  %599 = vmatpush1.msra.mxu0 %v120_v10 }
  0x2c   :  { %v245_v13 = vld [vmem:[#allocation5 + $0x588] sm:$0xff]  ;;  %v244_v15 = vld [vmem:[#allocation5 + $0x580] sm:$0xff]  ;;  %670 = vmatpush1.msra.mxu1 %v248_v11  ;;  %600 = vmatprep.subr.mxu0 %v117_v12 }
  0x2d   :  { %v113_v16 = vld [vmem:[#allocation5 + $0x168] sm:$0xff]  ;;  %671 = vmatprep.subr.mxu1 %v245_v13  ;;  %v112_v18 = vld [vmem:[#allocation5 + $0x160] sm:$0xff]  ;;  %601 = vmatpush1.msra.mxu0 %v116_v14 }
  0x2e   :  { %v241_v17 = vld [vmem:[#allocation5 + $0x568] sm:$0xff]  ;;  %v240_v19 = vld [vmem:[#allocation5 + $0x560] sm:$0xff]  ;;  %672 = vmatpush1.msra.mxu1 %v244_v15  ;;  %602 = vmatprep.subr.mxu0 %v113_v16 }
  0x2f   :  { %v109_v20 = vld [vmem:[#allocation5 + $0x148] sm:$0xff]  ;;  %673 = vmatprep.subr.mxu1 %v241_v17  ;;  %v108_v22 = vld [vmem:[#allocation5 + $0x140] sm:$0xff]  ;;  %603 = vmatpush1.msra.mxu0 %v112_v18 }
  0x30   :  { %v237_v21 = vld [vmem:[#allocation5 + $0x548] sm:$0xff]  ;;  %v236_v23 = vld [vmem:[#allocation5 + $0x540] sm:$0xff]  ;;  %674 = vmatpush1.msra.mxu1 %v240_v19  ;;  %604 = vmatprep.subr.mxu0 %v109_v20 }
  0x31   :  { %v105_v24 = vld [vmem:[#allocation5 + $0x128] sm:$0xff]  ;;  %675 = vmatprep.subr.mxu1 %v237_v21  ;;  %v104_v26 = vld [vmem:[#allocation5 + $0x120] sm:$0xff]  ;;  %605 = vmatpush1.msra.mxu0 %v108_v22 }
  0x32   :  { %v233_v25 = vld [vmem:[#allocation5 + $0x528] sm:$0xff]  ;;  %v232_v27 = vld [vmem:[#allocation5 + $0x520] sm:$0xff]  ;;  %676 = vmatpush1.msra.mxu1 %v236_v23  ;;  %606 = vmatprep.subr.mxu0 %v105_v24 }
  0x33   :  { %v101_v28 = vld [vmem:[#allocation5 + $0x108] sm:$0xff]  ;;  %677 = vmatprep.subr.mxu1 %v233_v25  ;;  %v100_v30 = vld [vmem:[#allocation5 + $0x100] sm:$0xff]  ;;  %607 = vmatpush1.msra.mxu0 %v104_v26 }
  0x34   :  { %v229_v29 = vld [vmem:[#allocation5 + $0x508] sm:$0xff]  ;;  %v228_v31 = vld [vmem:[#allocation5 + $0x500] sm:$0xff]  ;;  %678 = vmatpush1.msra.mxu1 %v232_v27  ;;  %608 = vmatprep.subr.mxu0 %v101_v28 }
  0x35   :  { %v97_v32 = vld [vmem:[#allocation5 + $0xe8] sm:$0xff]  ;;  %679 = vmatprep.subr.mxu1 %v229_v29  ;;  %v96_v34 = vld [vmem:[#allocation5 + $0xe0] sm:$0xff]  ;;  %609 = vmatpush1.msra.mxu0 %v100_v30 }
  0x36   :  { %v225_v33 = vld [vmem:[#allocation5 + $0x4e8] sm:$0xff]  ;;  %v224_v35 = vld [vmem:[#allocation5 + $0x4e0] sm:$0xff]  ;;  %680 = vmatpush1.msra.mxu1 %v228_v31  ;;  %610 = vmatprep.subr.mxu0 %v97_v32 }
  0x37   :  { %v93_v36 = vld [vmem:[#allocation5 + $0xc8] sm:$0xff]  ;;  %681 = vmatprep.subr.mxu1 %v225_v33  ;;  %v92_v38 = vld [vmem:[#allocation5 + $0xc0] sm:$0xff]  ;;  %611 = vmatpush1.msra.mxu0 %v96_v34 }
  0x38   :  { %v221_v37 = vld [vmem:[#allocation5 + $0x4c8] sm:$0xff]  ;;  %v220_v39 = vld [vmem:[#allocation5 + $0x4c0] sm:$0xff]  ;;  %682 = vmatpush1.msra.mxu1 %v224_v35  ;;  %612 = vmatprep.subr.mxu0 %v93_v36 }
  0x39   :  { %v89_v40 = vld [vmem:[#allocation5 + $0xa8] sm:$0xff]  ;;  %683 = vmatprep.subr.mxu1 %v221_v37  ;;  %v88_v42 = vld [vmem:[#allocation5 + $0xa0] sm:$0xff]  ;;  %613 = vmatpush1.msra.mxu0 %v92_v38 }
  0x3a   :  { %v217_v41 = vld [vmem:[#allocation5 + $0x4a8] sm:$0xff]  ;;  %v216_v43 = vld [vmem:[#allocation5 + $0x4a0] sm:$0xff]  ;;  %684 = vmatpush1.msra.mxu1 %v220_v39  ;;  %614 = vmatprep.subr.mxu0 %v89_v40 }
  0x3b   :  { %v85_v44 = vld [vmem:[#allocation5 + $0x88] sm:$0xff]  ;;  %685 = vmatprep.subr.mxu1 %v217_v41  ;;  %v84_v46 = vld [vmem:[#allocation5 + $0x80] sm:$0xff]  ;;  %615 = vmatpush1.msra.mxu0 %v88_v42 }
  0x3c   :  { %v213_v45 = vld [vmem:[#allocation5 + $0x488] sm:$0xff]  ;;  %v212_v47 = vld [vmem:[#allocation5 + $0x480] sm:$0xff]  ;;  %686 = vmatpush1.msra.mxu1 %v216_v43  ;;  %616 = vmatprep.subr.mxu0 %v85_v44 }
  0x3d   :  { %v81_v48 = vld [vmem:[#allocation5 + $0x68] sm:$0xff]  ;;  %687 = vmatprep.subr.mxu1 %v213_v45  ;;  %v80_v50 = vld [vmem:[#allocation5 + $0x60] sm:$0xff]  ;;  %617 = vmatpush1.msra.mxu0 %v84_v46 }
  0x3e   :  { %v209_v49 = vld [vmem:[#allocation5 + $0x468] sm:$0xff]  ;;  %v208_v51 = vld [vmem:[#allocation5 + $0x460] sm:$0xff]  ;;  %688 = vmatpush1.msra.mxu1 %v212_v47  ;;  %618 = vmatprep.subr.mxu0 %v81_v48 }
  0x3f   :  { %v77_v52 = vld [vmem:[#allocation5 + $0x48] sm:$0xff]  ;;  %689 = vmatprep.subr.mxu1 %v209_v49  ;;  %v76_v54 = vld [vmem:[#allocation5 + $0x40] sm:$0xff]  ;;  %619 = vmatpush1.msra.mxu0 %v80_v50 }
  0x40   :  { %v205_v53 = vld [vmem:[#allocation5 + $0x448] sm:$0xff]  ;;  %v204_v55 = vld [vmem:[#allocation5 + $0x440] sm:$0xff]  ;;  %690 = vmatpush1.msra.mxu1 %v208_v51  ;;  %620 = vmatprep.subr.mxu0 %v77_v52 }
  0x41   :  { %v73_v56 = vld [vmem:[#allocation5 + $0x28] sm:$0xff]  ;;  %691 = vmatprep.subr.mxu1 %v205_v53  ;;  %v72_v58 = vld [vmem:[#allocation5 + $0x20] sm:$0xff]  ;;  %621 = vmatpush1.msra.mxu0 %v76_v54 }
  0x42   :  { %v201_v57 = vld [vmem:[#allocation5 + $0x428] sm:$0xff]  ;;  %v200_v59 = vld [vmem:[#allocation5 + $0x420] sm:$0xff]  ;;  %692 = vmatpush1.msra.mxu1 %v204_v55  ;;  %622 = vmatprep.subr.mxu0 %v73_v56 }
  0x43   :  { %v69_v60 = vld [vmem:[#allocation5 + $0x8] sm:$0xff]  ;;  %693 = vmatprep.subr.mxu1 %v201_v57  ;;  %v68_v62 = vld [vmem:[#allocation5] sm:$0xff]  ;;  %623 = vmatpush1.msra.mxu0 %v72_v58 }
  0x44   :  { %v197_v61 = vld [vmem:[#allocation5 + $0x408] sm:$0xff]  ;;  %v196_v63 = vld [vmem:[#allocation5 + $0x400] sm:$0xff]  ;;  %694 = vmatpush1.msra.mxu1 %v200_v59  ;;  %624 = vmatprep.subr.mxu0 %v69_v60 }
  0x45   :  { %v193_v0 = vld [vmem:[#allocation5 + $0x3e8] sm:$0xff]  ;;  %695 = vmatprep.subr.mxu1 %v197_v61  ;;  %v192_v2 = vld [vmem:[#allocation5 + $0x3e0] sm:$0xff]  ;;  %625 = vmatpush1.msra.mxu0 %v68_v62 }
  0x46   :  { %v321_v1 = vld [vmem:[#allocation5 + $0x7e8] sm:$0xff]  ;;  %v320_v3 = vld [vmem:[#allocation5 + $0x7e0] sm:$0xff]  ;;  %696 = vmatpush1.msra.mxu1 %v196_v63  ;;  %626 = vmatprep.subr.mxu0 %v193_v0 }
  0x47   :  { %v189_v4 = vld [vmem:[#allocation5 + $0x3c8] sm:$0xff]  ;;  %697 = vmatprep.subr.mxu1 %v321_v1  ;;  %v188_v6 = vld [vmem:[#allocation5 + $0x3c0] sm:$0xff]  ;;  %627 = vmatpush2.msra.mxu0 %v192_v2  ;;  %v63_v1 = vld [vmem:[#allocation2 + $0x18] sm:$0xff] }
  0x48   :  { %v317_v5 = vld [vmem:[#allocation5 + $0x7c8] sm:$0xff]  ;;  %v316_v7 = vld [vmem:[#allocation5 + $0x7c0] sm:$0xff]  ;;  %698 = vmatpush2.msra.mxu1 %v320_v3  ;;  %628 = vmatprep.subr.mxu0 %v189_v4  ;;  %v62_v3 = vld [vmem:[#allocation2 + $0x10] sm:$0xff] }
  0x49   :  { %v185_v8 = vld [vmem:[#allocation5 + $0x3a8] sm:$0xff]  ;;  %699 = vmatprep.subr.mxu1 %v317_v5  ;;  %v184_v10 = vld [vmem:[#allocation5 + $0x3a0] sm:$0xff]  ;;  %629 = vmatpush2.msra.mxu0 %v188_v6 }
  0x4a   :  { %v313_v9 = vld [vmem:[#allocation5 + $0x7a8] sm:$0xff]  ;;  %v312_v11 = vld [vmem:[#allocation5 + $0x7a0] sm:$0xff]  ;;  %700 = vmatpush2.msra.mxu1 %v316_v7  ;;  %630 = vmatprep.subr.mxu0 %v185_v8 }
  0x4b   :  { %v181_v12 = vld [vmem:[#allocation5 + $0x388] sm:$0xff]  ;;  %701 = vmatprep.subr.mxu1 %v313_v9  ;;  %v180_v14 = vld [vmem:[#allocation5 + $0x380] sm:$0xff]  ;;  %631 = vmatpush2.msra.mxu0 %v184_v10 }
  0x4c   :  { %v309_v13 = vld [vmem:[#allocation5 + $0x788] sm:$0xff]  ;;  %v308_v15 = vld [vmem:[#allocation5 + $0x780] sm:$0xff]  ;;  %702 = vmatpush2.msra.mxu1 %v312_v11  ;;  %632 = vmatprep.subr.mxu0 %v181_v12 }
  0x4d   :  { %v177_v16 = vld [vmem:[#allocation5 + $0x368] sm:$0xff]  ;;  %703 = vmatprep.subr.mxu1 %v309_v13  ;;  %v176_v18 = vld [vmem:[#allocation5 + $0x360] sm:$0xff]  ;;  %633 = vmatpush2.msra.mxu0 %v180_v14 }
  0x4e   :  { %v305_v17 = vld [vmem:[#allocation5 + $0x768] sm:$0xff]  ;;  %v304_v19 = vld [vmem:[#allocation5 + $0x760] sm:$0xff]  ;;  %704 = vmatpush2.msra.mxu1 %v308_v15  ;;  %634 = vmatprep.subr.mxu0 %v177_v16 }
  0x4f   :  { %v173_v20 = vld [vmem:[#allocation5 + $0x348] sm:$0xff]  ;;  %705 = vmatprep.subr.mxu1 %v305_v17  ;;  %v172_v22 = vld [vmem:[#allocation5 + $0x340] sm:$0xff]  ;;  %635 = vmatpush2.msra.mxu0 %v176_v18 }
  0x50   :  { %v301_v21 = vld [vmem:[#allocation5 + $0x748] sm:$0xff]  ;;  %v300_v23 = vld [vmem:[#allocation5 + $0x740] sm:$0xff]  ;;  %706 = vmatpush2.msra.mxu1 %v304_v19  ;;  %636 = vmatprep.subr.mxu0 %v173_v20 }
  0x51   :  { %v169_v24 = vld [vmem:[#allocation5 + $0x328] sm:$0xff]  ;;  %707 = vmatprep.subr.mxu1 %v301_v21  ;;  %v168_v26 = vld [vmem:[#allocation5 + $0x320] sm:$0xff]  ;;  %637 = vmatpush2.msra.mxu0 %v172_v22 }
  0x52   :  { %v297_v25 = vld [vmem:[#allocation5 + $0x728] sm:$0xff]  ;;  %v296_v27 = vld [vmem:[#allocation5 + $0x720] sm:$0xff]  ;;  %708 = vmatpush2.msra.mxu1 %v300_v23  ;;  %638 = vmatprep.subr.mxu0 %v169_v24 }
  0x53   :  { %v165_v28 = vld [vmem:[#allocation5 + $0x308] sm:$0xff]  ;;  %709 = vmatprep.subr.mxu1 %v297_v25  ;;  %v164_v30 = vld [vmem:[#allocation5 + $0x300] sm:$0xff]  ;;  %639 = vmatpush2.msra.mxu0 %v168_v26 }
  0x54   :  { %v293_v29 = vld [vmem:[#allocation5 + $0x708] sm:$0xff]  ;;  %v292_v31 = vld [vmem:[#allocation5 + $0x700] sm:$0xff]  ;;  %710 = vmatpush2.msra.mxu1 %v296_v27  ;;  %640 = vmatprep.subr.mxu0 %v165_v28 }
  0x55   :  { %v161_v32 = vld [vmem:[#allocation5 + $0x2e8] sm:$0xff]  ;;  %711 = vmatprep.subr.mxu1 %v293_v29  ;;  %v160_v34 = vld [vmem:[#allocation5 + $0x2e0] sm:$0xff]  ;;  %641 = vmatpush2.msra.mxu0 %v164_v30 }
  0x56   :  { %v289_v33 = vld [vmem:[#allocation5 + $0x6e8] sm:$0xff]  ;;  %v288_v35 = vld [vmem:[#allocation5 + $0x6e0] sm:$0xff]  ;;  %712 = vmatpush2.msra.mxu1 %v292_v31  ;;  %642 = vmatprep.subr.mxu0 %v161_v32 }
  0x57   :  { %v157_v36 = vld [vmem:[#allocation5 + $0x2c8] sm:$0xff]  ;;  %713 = vmatprep.subr.mxu1 %v289_v33  ;;  %v156_v38 = vld [vmem:[#allocation5 + $0x2c0] sm:$0xff]  ;;  %643 = vmatpush2.msra.mxu0 %v160_v34 }
  0x58   :  { %v285_v37 = vld [vmem:[#allocation5 + $0x6c8] sm:$0xff]  ;;  %v284_v39 = vld [vmem:[#allocation5 + $0x6c0] sm:$0xff]  ;;  %714 = vmatpush2.msra.mxu1 %v288_v35  ;;  %644 = vmatprep.subr.mxu0 %v157_v36 }
  0x59   :  { %v153_v40 = vld [vmem:[#allocation5 + $0x2a8] sm:$0xff]  ;;  %715 = vmatprep.subr.mxu1 %v285_v37  ;;  %v152_v42 = vld [vmem:[#allocation5 + $0x2a0] sm:$0xff]  ;;  %645 = vmatpush2.msra.mxu0 %v156_v38 }
  0x5a   :  { %v281_v41 = vld [vmem:[#allocation5 + $0x6a8] sm:$0xff]  ;;  %v280_v43 = vld [vmem:[#allocation5 + $0x6a0] sm:$0xff]  ;;  %716 = vmatpush2.msra.mxu1 %v284_v39  ;;  %646 = vmatprep.subr.mxu0 %v153_v40 }
  0x5b   :  { %v149_v44 = vld [vmem:[#allocation5 + $0x288] sm:$0xff]  ;;  %717 = vmatprep.subr.mxu1 %v281_v41  ;;  %v148_v46 = vld [vmem:[#allocation5 + $0x280] sm:$0xff]  ;;  %647 = vmatpush2.msra.mxu0 %v152_v42 }
  0x5c   :  { %v277_v45 = vld [vmem:[#allocation5 + $0x688] sm:$0xff]  ;;  %v276_v47 = vld [vmem:[#allocation5 + $0x680] sm:$0xff]  ;;  %718 = vmatpush2.msra.mxu1 %v280_v43  ;;  %648 = vmatprep.subr.mxu0 %v149_v44 }
  0x5d   :  { %v145_v48 = vld [vmem:[#allocation5 + $0x268] sm:$0xff]  ;;  %719 = vmatprep.subr.mxu1 %v277_v45  ;;  %v144_v50 = vld [vmem:[#allocation5 + $0x260] sm:$0xff]  ;;  %649 = vmatpush2.msra.mxu0 %v148_v46 }
  0x5e   :  { %v273_v49 = vld [vmem:[#allocation5 + $0x668] sm:$0xff]  ;;  %v272_v51 = vld [vmem:[#allocation5 + $0x660] sm:$0xff]  ;;  %720 = vmatpush2.msra.mxu1 %v276_v47  ;;  %650 = vmatprep.subr.mxu0 %v145_v48 }
  0x5f   :  { %v141_v52 = vld [vmem:[#allocation5 + $0x248] sm:$0xff]  ;;  %721 = vmatprep.subr.mxu1 %v273_v49  ;;  %v140_v54 = vld [vmem:[#allocation5 + $0x240] sm:$0xff]  ;;  %651 = vmatpush2.msra.mxu0 %v144_v50 }
  0x60   :  { %v269_v53 = vld [vmem:[#allocation5 + $0x648] sm:$0xff]  ;;  %v268_v55 = vld [vmem:[#allocation5 + $0x640] sm:$0xff]  ;;  %722 = vmatpush2.msra.mxu1 %v272_v51  ;;  %652 = vmatprep.subr.mxu0 %v141_v52 }
  0x61   :  { %v137_v56 = vld [vmem:[#allocation5 + $0x228] sm:$0xff]  ;;  %723 = vmatprep.subr.mxu1 %v269_v53  ;;  %v136_v58 = vld [vmem:[#allocation5 + $0x220] sm:$0xff]  ;;  %653 = vmatpush2.msra.mxu0 %v140_v54 }
  0x62   :  { %v265_v57 = vld [vmem:[#allocation5 + $0x628] sm:$0xff]  ;;  %v264_v59 = vld [vmem:[#allocation5 + $0x620] sm:$0xff]  ;;  %724 = vmatpush2.msra.mxu1 %v268_v55  ;;  %654 = vmatprep.subr.mxu0 %v137_v56 }
  0x63   :  { %v133_v60 = vld [vmem:[#allocation5 + $0x208] sm:$0xff]  ;;  %725 = vmatprep.subr.mxu1 %v265_v57  ;;  %v132_v62 = vld [vmem:[#allocation5 + $0x200] sm:$0xff]  ;;  %655 = vmatpush2.msra.mxu0 %v136_v58 }
  0x64   :  { %v261_v61 = vld [vmem:[#allocation5 + $0x608] sm:$0xff]  ;;  %726 = vmatpush2.msra.mxu1 %v264_v59  ;;  %v260_v0 = vld [vmem:[#allocation5 + $0x600] sm:$0xff]  ;;  %656 = vmatprep.subr.mxu0 %v133_v60 }
  0x65   :  { %v61_v63 = vld [vmem:[#allocation2 + $0x8] sm:$0xff]  ;;  %727 = vmatprep.subr.mxu1 %v261_v61  ;;  %v1888_v2 = vld [vmem:[#allocation2] sm:$0xff]  ;;  %657 = vmatpush2.msra.mxu0 %v132_v62 }
  0x66   :  { %658 = vmatprep.mubr.f32.mxu0 %v61_v63  ;;  %v385_v4 = vld [vmem:[#allocation5 + $0x9e8] sm:$0xff]  ;;  %728 = vmatpush2.msra.mxu1 %v260_v0  ;;  %v384_v6 = vld [vmem:[#allocation5 + $0x9e0] sm:$0xff] }
  0x67   :  { %v513_v5 = vld [vmem:[#allocation5 + $0xde8] sm:$0xff]  ;;  %729 = vmatprep.mubr.f32.mxu1 %v63_v1  ;;  %v512_v7 = vld [vmem:[#allocation5 + $0xde0] sm:$0xff]  ;;  %659 = vmatmul.mubr.f32.vlgmr.msra.gmra.mxu0 %v1888_v2 }
  0x68   :  { %730 = vmatmul.mubr.f32.vlgmr.msra.gmra.mxu1 %v62_v3  ;;  %v381_v8 = vld [vmem:[#allocation5 + $0x9c8] sm:$0xff]  ;;  %736 = vmatprep.subr.mxu0 %v385_v4  ;;  %v380_v10 = vld [vmem:[#allocation5 + $0x9c0] sm:$0xff] }
  0x69   :  { %v509_v9 = vld [vmem:[#allocation5 + $0xdc8] sm:$0xff]  ;;  %807 = vmatprep.subr.mxu1 %v513_v5  ;;  %v508_v11 = vld [vmem:[#allocation5 + $0xdc0] sm:$0xff]  ;;  %737 = vmatpush1.msra.mxu0 %v384_v6 }
  0x6a   :  { %808 = vmatpush1.msra.mxu1 %v512_v7  ;;  %v377_v12 = vld [vmem:[#allocation5 + $0x9a8] sm:$0xff]  ;;  %738 = vmatprep.subr.mxu0 %v381_v8  ;;  %v376_v14 = vld [vmem:[#allocation5 + $0x9a0] sm:$0xff] }
  0x6b   :  { %v505_v13 = vld [vmem:[#allocation5 + $0xda8] sm:$0xff]  ;;  %809 = vmatprep.subr.mxu1 %v509_v9  ;;  %v504_v15 = vld [vmem:[#allocation5 + $0xda0] sm:$0xff]  ;;  %739 = vmatpush1.msra.mxu0 %v380_v10 }
  0x6c   :  { %810 = vmatpush1.msra.mxu1 %v508_v11  ;;  %v373_v16 = vld [vmem:[#allocation5 + $0x988] sm:$0xff]  ;;  %740 = vmatprep.subr.mxu0 %v377_v12  ;;  %v372_v18 = vld [vmem:[#allocation5 + $0x980] sm:$0xff] }
  0x6d   :  { %v501_v17 = vld [vmem:[#allocation5 + $0xd88] sm:$0xff]  ;;  %811 = vmatprep.subr.mxu1 %v505_v13  ;;  %v500_v19 = vld [vmem:[#allocation5 + $0xd80] sm:$0xff]  ;;  %741 = vmatpush1.msra.mxu0 %v376_v14 }
  0x6e   :  { %812 = vmatpush1.msra.mxu1 %v504_v15  ;;  %v369_v20 = vld [vmem:[#allocation5 + $0x968] sm:$0xff]  ;;  %742 = vmatprep.subr.mxu0 %v373_v16  ;;  %v368_v22 = vld [vmem:[#allocation5 + $0x960] sm:$0xff] }
  0x6f   :  { %v497_v21 = vld [vmem:[#allocation5 + $0xd68] sm:$0xff]  ;;  %813 = vmatprep.subr.mxu1 %v501_v17  ;;  %v496_v23 = vld [vmem:[#allocation5 + $0xd60] sm:$0xff]  ;;  %743 = vmatpush1.msra.mxu0 %v372_v18 }
  0x70   :  { %814 = vmatpush1.msra.mxu1 %v500_v19  ;;  %v365_v24 = vld [vmem:[#allocation5 + $0x948] sm:$0xff]  ;;  %744 = vmatprep.subr.mxu0 %v369_v20  ;;  %v364_v26 = vld [vmem:[#allocation5 + $0x940] sm:$0xff] }
  0x71   :  { %v493_v25 = vld [vmem:[#allocation5 + $0xd48] sm:$0xff]  ;;  %815 = vmatprep.subr.mxu1 %v497_v21  ;;  %v492_v27 = vld [vmem:[#allocation5 + $0xd40] sm:$0xff]  ;;  %745 = vmatpush1.msra.mxu0 %v368_v22 }
  0x72   :  { %816 = vmatpush1.msra.mxu1 %v496_v23  ;;  %v361_v28 = vld [vmem:[#allocation5 + $0x928] sm:$0xff]  ;;  %746 = vmatprep.subr.mxu0 %v365_v24  ;;  %v360_v30 = vld [vmem:[#allocation5 + $0x920] sm:$0xff] }
  0x73   :  { %v489_v29 = vld [vmem:[#allocation5 + $0xd28] sm:$0xff]  ;;  %817 = vmatprep.subr.mxu1 %v493_v25  ;;  %v488_v31 = vld [vmem:[#allocation5 + $0xd20] sm:$0xff]  ;;  %747 = vmatpush1.msra.mxu0 %v364_v26 }
  0x74   :  { %818 = vmatpush1.msra.mxu1 %v492_v27  ;;  %v357_v32 = vld [vmem:[#allocation5 + $0x908] sm:$0xff]  ;;  %748 = vmatprep.subr.mxu0 %v361_v28  ;;  %v356_v34 = vld [vmem:[#allocation5 + $0x900] sm:$0xff] }
  0x75   :  { %v485_v33 = vld [vmem:[#allocation5 + $0xd08] sm:$0xff]  ;;  %819 = vmatprep.subr.mxu1 %v489_v29  ;;  %v484_v35 = vld [vmem:[#allocation5 + $0xd00] sm:$0xff]  ;;  %749 = vmatpush1.msra.mxu0 %v360_v30 }
  0x76   :  { %820 = vmatpush1.msra.mxu1 %v488_v31  ;;  %v353_v36 = vld [vmem:[#allocation5 + $0x8e8] sm:$0xff]  ;;  %750 = vmatprep.subr.mxu0 %v357_v32  ;;  %v352_v38 = vld [vmem:[#allocation5 + $0x8e0] sm:$0xff] }
  0x77   :  { %v481_v37 = vld [vmem:[#allocation5 + $0xce8] sm:$0xff]  ;;  %821 = vmatprep.subr.mxu1 %v485_v33  ;;  %v480_v39 = vld [vmem:[#allocation5 + $0xce0] sm:$0xff]  ;;  %751 = vmatpush1.msra.mxu0 %v356_v34 }
  0x78   :  { %822 = vmatpush1.msra.mxu1 %v484_v35  ;;  %v349_v40 = vld [vmem:[#allocation5 + $0x8c8] sm:$0xff]  ;;  %752 = vmatprep.subr.mxu0 %v353_v36  ;;  %v348_v42 = vld [vmem:[#allocation5 + $0x8c0] sm:$0xff] }
  0x79   :  { %v477_v41 = vld [vmem:[#allocation5 + $0xcc8] sm:$0xff]  ;;  %823 = vmatprep.subr.mxu1 %v481_v37  ;;  %v476_v43 = vld [vmem:[#allocation5 + $0xcc0] sm:$0xff]  ;;  %753 = vmatpush1.msra.mxu0 %v352_v38 }
  0x7a   :  { %824 = vmatpush1.msra.mxu1 %v480_v39  ;;  %v345_v44 = vld [vmem:[#allocation5 + $0x8a8] sm:$0xff]  ;;  %754 = vmatprep.subr.mxu0 %v349_v40  ;;  %v344_v46 = vld [vmem:[#allocation5 + $0x8a0] sm:$0xff] }
  0x7b   :  { %v473_v45 = vld [vmem:[#allocation5 + $0xca8] sm:$0xff]  ;;  %825 = vmatprep.subr.mxu1 %v477_v41  ;;  %v472_v47 = vld [vmem:[#allocation5 + $0xca0] sm:$0xff]  ;;  %755 = vmatpush1.msra.mxu0 %v348_v42 }
  0x7c   :  { %826 = vmatpush1.msra.mxu1 %v476_v43  ;;  %v341_v48 = vld [vmem:[#allocation5 + $0x888] sm:$0xff]  ;;  %756 = vmatprep.subr.mxu0 %v345_v44  ;;  %v340_v50 = vld [vmem:[#allocation5 + $0x880] sm:$0xff] }
  0x7d   :  { %v469_v49 = vld [vmem:[#allocation5 + $0xc88] sm:$0xff]  ;;  %827 = vmatprep.subr.mxu1 %v473_v45  ;;  %v468_v51 = vld [vmem:[#allocation5 + $0xc80] sm:$0xff]  ;;  %757 = vmatpush1.msra.mxu0 %v344_v46 }
  0x7e   :  { %828 = vmatpush1.msra.mxu1 %v472_v47  ;;  %v337_v52 = vld [vmem:[#allocation5 + $0x868] sm:$0xff]  ;;  %758 = vmatprep.subr.mxu0 %v341_v48  ;;  %v336_v54 = vld [vmem:[#allocation5 + $0x860] sm:$0xff] }
  0x7f   :  { %v465_v53 = vld [vmem:[#allocation5 + $0xc68] sm:$0xff]  ;;  %829 = vmatprep.subr.mxu1 %v469_v49  ;;  %v464_v55 = vld [vmem:[#allocation5 + $0xc60] sm:$0xff]  ;;  %759 = vmatpush1.msra.mxu0 %v340_v50 }
  0x80   :  { %830 = vmatpush1.msra.mxu1 %v468_v51  ;;  %v333_v56 = vld [vmem:[#allocation5 + $0x848] sm:$0xff]  ;;  %760 = vmatprep.subr.mxu0 %v337_v52  ;;  %v332_v58 = vld [vmem:[#allocation5 + $0x840] sm:$0xff] }
  0x81   :  { %v461_v57 = vld [vmem:[#allocation5 + $0xc48] sm:$0xff]  ;;  %831 = vmatprep.subr.mxu1 %v465_v53  ;;  %v460_v59 = vld [vmem:[#allocation5 + $0xc40] sm:$0xff]  ;;  %761 = vmatpush1.msra.mxu0 %v336_v54 }
  0x82   :  { %832 = vmatpush1.msra.mxu1 %v464_v55  ;;  %v329_v60 = vld [vmem:[#allocation5 + $0x828] sm:$0xff]  ;;  %762 = vmatprep.subr.mxu0 %v333_v56  ;;  %v328_v62 = vld [vmem:[#allocation5 + $0x820] sm:$0xff] }
  0x83   :  { %v457_v61 = vld [vmem:[#allocation5 + $0xc28] sm:$0xff]  ;;  %833 = vmatprep.subr.mxu1 %v461_v57  ;;  %v456_v63 = vld [vmem:[#allocation5 + $0xc20] sm:$0xff]  ;;  %763 = vmatpush1.msra.mxu0 %v332_v58  ;;  %v67_v57 = vld [vmem:[#allocation2 + $0x38] sm:$0xff] }
  0x84   :  { %834 = vmatpush1.msra.mxu1 %v460_v59  ;;  %v325_v0 = vld [vmem:[#allocation5 + $0x808] sm:$0xff]  ;;  %764 = vmatprep.subr.mxu0 %v329_v60  ;;  %v324_v3 = vld [vmem:[#allocation5 + $0x800] sm:$0xff]  ;;  %v66_v59 = vld [vmem:[#allocation2 + $0x30] sm:$0xff] }
  0x85   :  { %v453_v1 = vld [vmem:[#allocation5 + $0xc08] sm:$0xff]  ;;  %835 = vmatprep.subr.mxu1 %v457_v61  ;;  %v452_v4 = vld [vmem:[#allocation5 + $0xc00] sm:$0xff]  ;;  %765 = vmatpush1.msra.mxu0 %v328_v62  ;;  %v131_v60 = vld [vmem:[#allocation5 + $0x1f8] sm:$0xff] }
  0x86   :  { %836 = vmatpush1.msra.mxu1 %v456_v63  ;;  %v449_v5 = vld [vmem:[#allocation5 + $0xbe8] sm:$0xff]  ;;  %766 = vmatprep.subr.mxu0 %v325_v0  ;;  %v448_v7 = vld [vmem:[#allocation5 + $0xbe0] sm:$0xff]  ;;  %v130_v62 = vld [vmem:[#allocation5 + $0x1f0] sm:$0xff] }
  0x87   :  { %v565_v6 = vld [vmem:[#allocation5 + $0xf88] sm:$0xff]  ;;  %837 = vmatprep.subr.mxu1 %v453_v1  ;;  %v564_v8 = vld [vmem:[#allocation5 + $0xf80] sm:$0xff]  ;;  %767 = vmatpush1.msra.mxu0 %v324_v3  ;;  %v127_v0 = vld [vmem:[#allocation5 + $0x1d8] sm:$0xff] }
  0x88   :  { %838 = vmatpush1.msra.mxu1 %v452_v4  ;;  %v445_v9 = vld [vmem:[#allocation5 + $0xbc8] sm:$0xff]  ;;  %768 = vmatprep.subr.mxu0 %v449_v5  ;;  %v444_v11 = vld [vmem:[#allocation5 + $0xbc0] sm:$0xff]  ;;  %v126_v3 = vld [vmem:[#allocation5 + $0x1d0] sm:$0xff] }
  0x89   :  { %v561_v10 = vld [vmem:[#allocation5 + $0xf68] sm:$0xff]  ;;  %845 = vmatprep.subr.mxu1 %v565_v6  ;;  %v560_v12 = vld [vmem:[#allocation5 + $0xf60] sm:$0xff]  ;;  %769 = vmatpush2.msra.mxu0 %v448_v7  ;;  %v123_v5 = vld [vmem:[#allocation5 + $0x1b8] sm:$0xff] }
  0x8a   :  { %846 = vmatpush2.msra.mxu1 %v564_v8  ;;  %v441_v13 = vld [vmem:[#allocation5 + $0xba8] sm:$0xff]  ;;  %770 = vmatprep.subr.mxu0 %v445_v9  ;;  %v440_v15 = vld [vmem:[#allocation5 + $0xba0] sm:$0xff]  ;;  %v122_v8 = vld [vmem:[#allocation5 + $0x1b0] sm:$0xff] }
  0x8b   :  { %v557_v14 = vld [vmem:[#allocation5 + $0xf48] sm:$0xff]  ;;  %847 = vmatprep.subr.mxu1 %v561_v10  ;;  %v556_v16 = vld [vmem:[#allocation5 + $0xf40] sm:$0xff]  ;;  %771 = vmatpush2.msra.mxu0 %v444_v11  ;;  %v119_v10 = vld [vmem:[#allocation5 + $0x198] sm:$0xff] }
  0x8c   :  { %848 = vmatpush2.msra.mxu1 %v560_v12  ;;  %v437_v17 = vld [vmem:[#allocation5 + $0xb88] sm:$0xff]  ;;  %772 = vmatprep.subr.mxu0 %v441_v13  ;;  %v436_v19 = vld [vmem:[#allocation5 + $0xb80] sm:$0xff]  ;;  %v259_v11 = vld [vmem:[#allocation5 + $0x5f8] sm:$0xff] }
  0x8d   :  { %v553_v18 = vld [vmem:[#allocation5 + $0xf28] sm:$0xff]  ;;  %849 = vmatprep.subr.mxu1 %v557_v14  ;;  %v552_v20 = vld [vmem:[#allocation5 + $0xf20] sm:$0xff]  ;;  %773 = vmatpush2.msra.mxu0 %v440_v15  ;;  %v118_v12 = vld [vmem:[#allocation5 + $0x190] sm:$0xff] }
  0x8e   :  { %850 = vmatpush2.msra.mxu1 %v556_v16  ;;  %v433_v21 = vld [vmem:[#allocation5 + $0xb68] sm:$0xff]  ;;  %774 = vmatprep.subr.mxu0 %v437_v17  ;;  %v432_v23 = vld [vmem:[#allocation5 + $0xb60] sm:$0xff]  ;;  %v258_v13 = vld [vmem:[#allocation5 + $0x5f0] sm:$0xff] }
  0x8f   :  { %v549_v22 = vld [vmem:[#allocation5 + $0xf08] sm:$0xff]  ;;  %851 = vmatprep.subr.mxu1 %v553_v18  ;;  %v548_v24 = vld [vmem:[#allocation5 + $0xf00] sm:$0xff]  ;;  %775 = vmatpush2.msra.mxu0 %v436_v19  ;;  %v115_v14 = vld [vmem:[#allocation5 + $0x178] sm:$0xff] }
  0x90   :  { %852 = vmatpush2.msra.mxu1 %v552_v20  ;;  %v429_v25 = vld [vmem:[#allocation5 + $0xb48] sm:$0xff]  ;;  %776 = vmatprep.subr.mxu0 %v433_v21  ;;  %v428_v27 = vld [vmem:[#allocation5 + $0xb40] sm:$0xff]  ;;  %v255_v15 = vld [vmem:[#allocation5 + $0x5d8] sm:$0xff] }
  0x91   :  { %v545_v26 = vld [vmem:[#allocation5 + $0xee8] sm:$0xff]  ;;  %853 = vmatprep.subr.mxu1 %v549_v22  ;;  %v544_v28 = vld [vmem:[#allocation5 + $0xee0] sm:$0xff]  ;;  %777 = vmatpush2.msra.mxu0 %v432_v23  ;;  %v114_v16 = vld [vmem:[#allocation5 + $0x170] sm:$0xff] }
  0x92   :  { %854 = vmatpush2.msra.mxu1 %v548_v24  ;;  %v425_v29 = vld [vmem:[#allocation5 + $0xb28] sm:$0xff]  ;;  %778 = vmatprep.subr.mxu0 %v429_v25  ;;  %v424_v31 = vld [vmem:[#allocation5 + $0xb20] sm:$0xff]  ;;  %v254_v17 = vld [vmem:[#allocation5 + $0x5d0] sm:$0xff] }
  0x93   :  { %v541_v30 = vld [vmem:[#allocation5 + $0xec8] sm:$0xff]  ;;  %855 = vmatprep.subr.mxu1 %v545_v26  ;;  %v540_v32 = vld [vmem:[#allocation5 + $0xec0] sm:$0xff]  ;;  %779 = vmatpush2.msra.mxu0 %v428_v27  ;;  %v111_v18 = vld [vmem:[#allocation5 + $0x158] sm:$0xff] }
  0x94   :  { %856 = vmatpush2.msra.mxu1 %v544_v28  ;;  %v421_v33 = vld [vmem:[#allocation5 + $0xb08] sm:$0xff]  ;;  %780 = vmatprep.subr.mxu0 %v425_v29  ;;  %v420_v35 = vld [vmem:[#allocation5 + $0xb00] sm:$0xff]  ;;  %v251_v19 = vld [vmem:[#allocation5 + $0x5b8] sm:$0xff] }
  0x95   :  { %v537_v34 = vld [vmem:[#allocation5 + $0xea8] sm:$0xff]  ;;  %857 = vmatprep.subr.mxu1 %v541_v30  ;;  %v536_v36 = vld [vmem:[#allocation5 + $0xea0] sm:$0xff]  ;;  %781 = vmatpush2.msra.mxu0 %v424_v31  ;;  %v110_v20 = vld [vmem:[#allocation5 + $0x150] sm:$0xff] }
  0x96   :  { %858 = vmatpush2.msra.mxu1 %v540_v32  ;;  %v417_v37 = vld [vmem:[#allocation5 + $0xae8] sm:$0xff]  ;;  %782 = vmatprep.subr.mxu0 %v421_v33  ;;  %v416_v39 = vld [vmem:[#allocation5 + $0xae0] sm:$0xff]  ;;  %v250_v21 = vld [vmem:[#allocation5 + $0x5b0] sm:$0xff] }
  0x97   :  { %v533_v38 = vld [vmem:[#allocation5 + $0xe88] sm:$0xff]  ;;  %859 = vmatprep.subr.mxu1 %v537_v34  ;;  %v532_v40 = vld [vmem:[#allocation5 + $0xe80] sm:$0xff]  ;;  %783 = vmatpush2.msra.mxu0 %v420_v35  ;;  %v107_v22 = vld [vmem:[#allocation5 + $0x138] sm:$0xff] }
  0x98   :  { %860 = vmatpush2.msra.mxu1 %v536_v36  ;;  %v413_v41 = vld [vmem:[#allocation5 + $0xac8] sm:$0xff]  ;;  %784 = vmatprep.subr.mxu0 %v417_v37  ;;  %v412_v43 = vld [vmem:[#allocation5 + $0xac0] sm:$0xff]  ;;  %v247_v23 = vld [vmem:[#allocation5 + $0x598] sm:$0xff] }
  0x99   :  { %v529_v42 = vld [vmem:[#allocation5 + $0xe68] sm:$0xff]  ;;  %861 = vmatprep.subr.mxu1 %v533_v38  ;;  %v528_v44 = vld [vmem:[#allocation5 + $0xe60] sm:$0xff]  ;;  %785 = vmatpush2.msra.mxu0 %v416_v39  ;;  %v106_v24 = vld [vmem:[#allocation5 + $0x130] sm:$0xff] }
  0x9a   :  { %862 = vmatpush2.msra.mxu1 %v532_v40  ;;  %v409_v45 = vld [vmem:[#allocation5 + $0xaa8] sm:$0xff]  ;;  %786 = vmatprep.subr.mxu0 %v413_v41  ;;  %v408_v47 = vld [vmem:[#allocation5 + $0xaa0] sm:$0xff]  ;;  %v246_v25 = vld [vmem:[#allocation5 + $0x590] sm:$0xff] }
  0x9b   :  { %v525_v46 = vld [vmem:[#allocation5 + $0xe48] sm:$0xff]  ;;  %863 = vmatprep.subr.mxu1 %v529_v42  ;;  %v524_v48 = vld [vmem:[#allocation5 + $0xe40] sm:$0xff]  ;;  %787 = vmatpush2.msra.mxu0 %v412_v43  ;;  %v103_v26 = vld [vmem:[#allocation5 + $0x118] sm:$0xff] }
  0x9c   :  { %864 = vmatpush2.msra.mxu1 %v528_v44  ;;  %v405_v49 = vld [vmem:[#allocation5 + $0xa88] sm:$0xff]  ;;  %788 = vmatprep.subr.mxu0 %v409_v45  ;;  %v404_v51 = vld [vmem:[#allocation5 + $0xa80] sm:$0xff]  ;;  %v243_v27 = vld [vmem:[#allocation5 + $0x578] sm:$0xff] }
  0x9d   :  { %v521_v50 = vld [vmem:[#allocation5 + $0xe28] sm:$0xff]  ;;  %865 = vmatprep.subr.mxu1 %v525_v46  ;;  %v520_v52 = vld [vmem:[#allocation5 + $0xe20] sm:$0xff]  ;;  %789 = vmatpush2.msra.mxu0 %v408_v47  ;;  %v102_v28 = vld [vmem:[#allocation5 + $0x110] sm:$0xff] }
  0x9e   :  { %866 = vmatpush2.msra.mxu1 %v524_v48  ;;  %v401_v53 = vld [vmem:[#allocation5 + $0xa68] sm:$0xff]  ;;  %790 = vmatprep.subr.mxu0 %v405_v49  ;;  %v400_v55 = vld [vmem:[#allocation5 + $0xa60] sm:$0xff]  ;;  %v242_v29 = vld [vmem:[#allocation5 + $0x570] sm:$0xff] }
  0x9f   :  { %v517_v54 = vld [vmem:[#allocation5 + $0xe08] sm:$0xff]  ;;  %867 = vmatprep.subr.mxu1 %v521_v50  ;;  %v516_v56 = vld [vmem:[#allocation5 + $0xe00] sm:$0xff]  ;;  %791 = vmatpush2.msra.mxu0 %v404_v51  ;;  %v99_v30 = vld [vmem:[#allocation5 + $0xf8] sm:$0xff] }
  0xa0   :  { %868 = vmatpush2.msra.mxu1 %v520_v52  ;;  %v397_v58 = vld [vmem:[#allocation5 + $0xa48] sm:$0xff]  ;;  %792 = vmatprep.subr.mxu0 %v401_v53  ;;  %v396_v61 = vld [vmem:[#allocation5 + $0xa40] sm:$0xff]  ;;  %v239_v31 = vld [vmem:[#allocation5 + $0x558] sm:$0xff] }
  0xa1   :  { %869 = vmatprep.subr.mxu1 %v517_v54  ;;  %793 = vmatpush2.msra.mxu0 %v400_v55  ;;  %v393_v63 = vld [vmem:[#allocation5 + $0xa28] sm:$0xff]  ;;  %v392_v1 = vld [vmem:[#allocation5 + $0xa20] sm:$0xff]  ;;  %v98_v32 = vld [vmem:[#allocation5 + $0xf0] sm:$0xff] }
  0xa2   :  { %870 = vmatpush2.msra.mxu1 %v516_v56  ;;  %1650 = vmatprep.mubr.msk.f32.mxu1 %vm590_vm0, %v67_v57  ;;  %v389_v4 = vld [vmem:[#allocation5 + $0xa08] sm:$0xff]  ;;  %v388_v6 = vld [vmem:[#allocation5 + $0xa00] sm:$0xff]  ;;  %v238_v33 = vld [vmem:[#allocation5 + $0x550] sm:$0xff] }
  0xa3   :  { %794 = vmatprep.subr.mxu0 %v397_v58  ;;  %872 = vmatmul.mubr.f32.vlgmr.msra.gmra.mxu1 %v66_v59  ;;  %v65_v7 = vld [vmem:[#allocation2 + $0x28] sm:$0xff]  ;;  %v64_v9 = vld [vmem:[#allocation2 + $0x20] sm:$0xff]  ;;  %v95_v34 = vld [vmem:[#allocation5 + $0xd8] sm:$0xff] }
  0xa4   :  { %878 = vmatprep.subr.mxu1 %v131_v60  ;;  %795 = vmatpush2.msra.mxu0 %v396_v61  ;;  %v235_v35 = vld [vmem:[#allocation5 + $0x538] sm:$0xff]  ;;  %v94_v36 = vld [vmem:[#allocation5 + $0xd0] sm:$0xff] }
  0xa5   :  { %879 = vmatpush1.msra.mxu1 %v130_v62  ;;  %796 = vmatprep.subr.mxu0 %v393_v63  ;;  %v234_v37 = vld [vmem:[#allocation5 + $0x530] sm:$0xff]  ;;  %v91_v38 = vld [vmem:[#allocation5 + $0xb8] sm:$0xff] }
  0xa6   :  { %880 = vmatprep.subr.mxu1 %v127_v0  ;;  %797 = vmatpush2.msra.mxu0 %v392_v1  ;;  %v231_v39 = vld [vmem:[#allocation5 + $0x518] sm:$0xff]  ;;  %v90_v40 = vld [vmem:[#allocation5 + $0xb0] sm:$0xff] }
  0xa7   :  { %881 = vmatpush1.msra.mxu1 %v126_v3  ;;  %798 = vmatprep.subr.mxu0 %v389_v4  ;;  %v230_v41 = vld [vmem:[#allocation5 + $0x510] sm:$0xff]  ;;  %v87_v42 = vld [vmem:[#allocation5 + $0x98] sm:$0xff] }
  0xa8   :  { %882 = vmatprep.subr.mxu1 %v123_v5  ;;  %799 = vmatpush2.msra.mxu0 %v388_v6  ;;  %v227_v43 = vld [vmem:[#allocation5 + $0x4f8] sm:$0xff]  ;;  %v86_v44 = vld [vmem:[#allocation5 + $0x90] sm:$0xff] }
  0xa9   :  { %800 = vmatprep.mubr.f32.mxu0 %v65_v7  ;;  %883 = vmatpush1.msra.mxu1 %v122_v8  ;;  %v226_v45 = vld [vmem:[#allocation5 + $0x4f0] sm:$0xff]  ;;  %v83_v46 = vld [vmem:[#allocation5 + $0x78] sm:$0xff] }
  0xaa   :  { %801 = vmatmul.mubr.f32.vlgmr.msra.gmra.mxu0 %v64_v9  ;;  %884 = vmatprep.subr.mxu1 %v119_v10  ;;  %v223_v47 = vld [vmem:[#allocation5 + $0x4d8] sm:$0xff]  ;;  %v82_v48 = vld [vmem:[#allocation5 + $0x70] sm:$0xff] }
  0xab   :  { %949 = vmatprep.subr.mxu0 %v259_v11  ;;  %885 = vmatpush1.msra.mxu1 %v118_v12  ;;  %v222_v49 = vld [vmem:[#allocation5 + $0x4d0] sm:$0xff]  ;;  %v79_v50 = vld [vmem:[#allocation5 + $0x58] sm:$0xff] }
  0xac   :  { %950 = vmatpush1.msra.mxu0 %v258_v13  ;;  %886 = vmatprep.subr.mxu1 %v115_v14  ;;  %v219_v51 = vld [vmem:[#allocation5 + $0x4b8] sm:$0xff]  ;;  %v78_v52 = vld [vmem:[#allocation5 + $0x50] sm:$0xff] }
  0xad   :  { %951 = vmatprep.subr.mxu0 %v255_v15  ;;  %887 = vmatpush1.msra.mxu1 %v114_v16  ;;  %v218_v53 = vld [vmem:[#allocation5 + $0x4b0] sm:$0xff]  ;;  %v75_v54 = vld [vmem:[#allocation5 + $0x38] sm:$0xff] }
  0xae   :  { %952 = vmatpush1.msra.mxu0 %v254_v17  ;;  %888 = vmatprep.subr.mxu1 %v111_v18  ;;  %v215_v55 = vld [vmem:[#allocation5 + $0x498] sm:$0xff]  ;;  %v74_v56 = vld [vmem:[#allocation5 + $0x30] sm:$0xff] }
  0xaf   :  { %953 = vmatprep.subr.mxu0 %v251_v19  ;;  %889 = vmatpush1.msra.mxu1 %v110_v20  ;;  %v214_v57 = vld [vmem:[#allocation5 + $0x490] sm:$0xff]  ;;  %v71_v58 = vld [vmem:[#allocation5 + $0x18] sm:$0xff] }
  0xb0   :  { %954 = vmatpush1.msra.mxu0 %v250_v21  ;;  %890 = vmatprep.subr.mxu1 %v107_v22  ;;  %v211_v59 = vld [vmem:[#allocation5 + $0x478] sm:$0xff]  ;;  %v70_v60 = vld [vmem:[#allocation5 + $0x10] sm:$0xff] }
  0xb1   :  { %955 = vmatprep.subr.mxu0 %v247_v23  ;;  %891 = vmatpush1.msra.mxu1 %v106_v24  ;;  %v210_v61 = vld [vmem:[#allocation5 + $0x470] sm:$0xff]  ;;  %v195_v62 = vld [vmem:[#allocation5 + $0x3f8] sm:$0xff] }
  0xb2   :  { %956 = vmatpush1.msra.mxu0 %v246_v25  ;;  %892 = vmatprep.subr.mxu1 %v103_v26  ;;  %v207_v63 = vld [vmem:[#allocation5 + $0x458] sm:$0xff]  ;;  %v194_v0 = vld [vmem:[#allocation5 + $0x3f0] sm:$0xff] }
  0xb3   :  { %957 = vmatprep.subr.mxu0 %v243_v27  ;;  %893 = vmatpush1.msra.mxu1 %v102_v28  ;;  %v206_v1 = vld [vmem:[#allocation5 + $0x450] sm:$0xff]  ;;  %v191_v3 = vld [vmem:[#allocation5 + $0x3d8] sm:$0xff] }
  0xb4   :  { %958 = vmatpush1.msra.mxu0 %v242_v29  ;;  %894 = vmatprep.subr.mxu1 %v99_v30  ;;  %v203_v4 = vld [vmem:[#allocation5 + $0x438] sm:$0xff]  ;;  %v190_v5 = vld [vmem:[#allocation5 + $0x3d0] sm:$0xff] }
  0xb5   :  { %959 = vmatprep.subr.mxu0 %v239_v31  ;;  %895 = vmatpush1.msra.mxu1 %v98_v32  ;;  %v202_v6 = vld [vmem:[#allocation5 + $0x430] sm:$0xff]  ;;  %v187_v7 = vld [vmem:[#allocation5 + $0x3b8] sm:$0xff] }
  0xb6   :  { %960 = vmatpush1.msra.mxu0 %v238_v33  ;;  %896 = vmatprep.subr.mxu1 %v95_v34  ;;  %v199_v8 = vld [vmem:[#allocation5 + $0x418] sm:$0xff]  ;;  %v186_v9 = vld [vmem:[#allocation5 + $0x3b0] sm:$0xff] }
  0xb7   :  { %961 = vmatprep.subr.mxu0 %v235_v35  ;;  %897 = vmatpush1.msra.mxu1 %v94_v36  ;;  %v198_v10 = vld [vmem:[#allocation5 + $0x410] sm:$0xff]  ;;  %v183_v11 = vld [vmem:[#allocation5 + $0x398] sm:$0xff] }
  0xb8   :  { %962 = vmatpush1.msra.mxu0 %v234_v37  ;;  %898 = vmatprep.subr.mxu1 %v91_v38  ;;  %v323_v12 = vld [vmem:[#allocation5 + $0x7f8] sm:$0xff]  ;;  %v182_v13 = vld [vmem:[#allocation5 + $0x390] sm:$0xff] }
  0xb9   :  { %963 = vmatprep.subr.mxu0 %v231_v39  ;;  %899 = vmatpush1.msra.mxu1 %v90_v40  ;;  %v322_v14 = vld [vmem:[#allocation5 + $0x7f0] sm:$0xff]  ;;  %v179_v15 = vld [vmem:[#allocation5 + $0x378] sm:$0xff] }
  0xba   :  { %964 = vmatpush1.msra.mxu0 %v230_v41  ;;  %900 = vmatprep.subr.mxu1 %v87_v42  ;;  %v319_v16 = vld [vmem:[#allocation5 + $0x7d8] sm:$0xff]  ;;  %v178_v17 = vld [vmem:[#allocation5 + $0x370] sm:$0xff] }
  0xbb   :  { %965 = vmatprep.subr.mxu0 %v227_v43  ;;  %901 = vmatpush1.msra.mxu1 %v86_v44  ;;  %v318_v18 = vld [vmem:[#allocation5 + $0x7d0] sm:$0xff]  ;;  %v175_v19 = vld [vmem:[#allocation5 + $0x358] sm:$0xff] }
  0xbc   :  { %966 = vmatpush1.msra.mxu0 %v226_v45  ;;  %902 = vmatprep.subr.mxu1 %v83_v46  ;;  %v315_v20 = vld [vmem:[#allocation5 + $0x7b8] sm:$0xff]  ;;  %v174_v21 = vld [vmem:[#allocation5 + $0x350] sm:$0xff] }
  0xbd   :  { %967 = vmatprep.subr.mxu0 %v223_v47  ;;  %903 = vmatpush1.msra.mxu1 %v82_v48  ;;  %v314_v22 = vld [vmem:[#allocation5 + $0x7b0] sm:$0xff]  ;;  %v171_v23 = vld [vmem:[#allocation5 + $0x338] sm:$0xff] }
  0xbe   :  { %968 = vmatpush1.msra.mxu0 %v222_v49  ;;  %904 = vmatprep.subr.mxu1 %v79_v50  ;;  %v311_v24 = vld [vmem:[#allocation5 + $0x798] sm:$0xff]  ;;  %v170_v25 = vld [vmem:[#allocation5 + $0x330] sm:$0xff] }
  0xbf   :  { %969 = vmatprep.subr.mxu0 %v219_v51  ;;  %905 = vmatpush1.msra.mxu1 %v78_v52  ;;  %v310_v26 = vld [vmem:[#allocation5 + $0x790] sm:$0xff]  ;;  %v167_v27 = vld [vmem:[#allocation5 + $0x318] sm:$0xff] }
  0xc0   :  { %970 = vmatpush1.msra.mxu0 %v218_v53  ;;  %906 = vmatprep.subr.mxu1 %v75_v54  ;;  %v307_v28 = vld [vmem:[#allocation5 + $0x778] sm:$0xff]  ;;  %v166_v29 = vld [vmem:[#allocation5 + $0x310] sm:$0xff] }
  0xc1   :  { %971 = vmatprep.subr.mxu0 %v215_v55  ;;  %907 = vmatpush1.msra.mxu1 %v74_v56  ;;  %v306_v30 = vld [vmem:[#allocation5 + $0x770] sm:$0xff]  ;;  %v163_v31 = vld [vmem:[#allocation5 + $0x2f8] sm:$0xff] }
  0xc2   :  { %972 = vmatpush1.msra.mxu0 %v214_v57  ;;  %908 = vmatprep.subr.mxu1 %v71_v58  ;;  %v303_v32 = vld [vmem:[#allocation5 + $0x758] sm:$0xff]  ;;  %v162_v33 = vld [vmem:[#allocation5 + $0x2f0] sm:$0xff] }
  0xc3   :  { %973 = vmatprep.subr.mxu0 %v211_v59  ;;  %909 = vmatpush1.msra.mxu1 %v70_v60  ;;  %v302_v34 = vld [vmem:[#allocation5 + $0x750] sm:$0xff]  ;;  %v159_v35 = vld [vmem:[#allocation5 + $0x2d8] sm:$0xff] }
  0xc4   :  { %974 = vmatpush1.msra.mxu0 %v210_v61  ;;  %910 = vmatprep.subr.mxu1 %v195_v62  ;;  %v299_v36 = vld [vmem:[#allocation5 + $0x738] sm:$0xff]  ;;  %v158_v37 = vld [vmem:[#allocation5 + $0x2d0] sm:$0xff] }
  0xc5   :  { %975 = vmatprep.subr.mxu0 %v207_v63  ;;  %911 = vmatpush2.msra.mxu1 %v194_v0  ;;  %v298_v38 = vld [vmem:[#allocation5 + $0x730] sm:$0xff]  ;;  %v155_v39 = vld [vmem:[#allocation5 + $0x2b8] sm:$0xff] }
  0xc6   :  { %976 = vmatpush1.msra.mxu0 %v206_v1  ;;  %912 = vmatprep.subr.mxu1 %v191_v3  ;;  %v295_v40 = vld [vmem:[#allocation5 + $0x718] sm:$0xff]  ;;  %v154_v41 = vld [vmem:[#allocation5 + $0x2b0] sm:$0xff]  ;;  %v1743_v1 = vld [vmem:[#allocation2 + $0x8] sm:$0xff] }
  0xc7   :  { %977 = vmatprep.subr.mxu0 %v203_v4  ;;  %913 = vmatpush2.msra.mxu1 %v190_v5  ;;  %v294_v42 = vld [vmem:[#allocation5 + $0x710] sm:$0xff]  ;;  %v151_v43 = vld [vmem:[#allocation5 + $0x298] sm:$0xff] }
  0xc8   :  { %978 = vmatpush1.msra.mxu0 %v202_v6  ;;  %914 = vmatprep.subr.mxu1 %v187_v7  ;;  %v291_v44 = vld [vmem:[#allocation5 + $0x6f8] sm:$0xff]  ;;  %v150_v45 = vld [vmem:[#allocation5 + $0x290] sm:$0xff] }
  0xc9   :  { %979 = vmatprep.subr.mxu0 %v199_v8  ;;  %915 = vmatpush2.msra.mxu1 %v186_v9  ;;  %v290_v46 = vld [vmem:[#allocation5 + $0x6f0] sm:$0xff]  ;;  %v147_v47 = vld [vmem:[#allocation5 + $0x278] sm:$0xff] }
  0xca   :  { %980 = vmatpush1.msra.mxu0 %v198_v10  ;;  %916 = vmatprep.subr.mxu1 %v183_v11  ;;  %v287_v48 = vld [vmem:[#allocation5 + $0x6d8] sm:$0xff]  ;;  %v146_v49 = vld [vmem:[#allocation5 + $0x270] sm:$0xff] }
  0xcb   :  { %981 = vmatprep.subr.mxu0 %v323_v12  ;;  %917 = vmatpush2.msra.mxu1 %v182_v13  ;;  %v286_v50 = vld [vmem:[#allocation5 + $0x6d0] sm:$0xff]  ;;  %v143_v51 = vld [vmem:[#allocation5 + $0x258] sm:$0xff] }
  0xcc   :  { %982 = vmatpush2.msra.mxu0 %v322_v14  ;;  %918 = vmatprep.subr.mxu1 %v179_v15  ;;  %v283_v52 = vld [vmem:[#allocation5 + $0x6b8] sm:$0xff]  ;;  %v142_v53 = vld [vmem:[#allocation5 + $0x250] sm:$0xff] }
  0xcd   :  { %983 = vmatprep.subr.mxu0 %v319_v16  ;;  %919 = vmatpush2.msra.mxu1 %v178_v17  ;;  %v282_v54 = vld [vmem:[#allocation5 + $0x6b0] sm:$0xff]  ;;  %v139_v55 = vld [vmem:[#allocation5 + $0x238] sm:$0xff] }
  0xce   :  { %984 = vmatpush2.msra.mxu0 %v318_v18  ;;  %920 = vmatprep.subr.mxu1 %v175_v19  ;;  %v279_v56 = vld [vmem:[#allocation5 + $0x698] sm:$0xff]  ;;  %v138_v57 = vld [vmem:[#allocation5 + $0x230] sm:$0xff] }
  0xcf   :  { %985 = vmatprep.subr.mxu0 %v315_v20  ;;  %921 = vmatpush2.msra.mxu1 %v174_v21  ;;  %v278_v58 = vld [vmem:[#allocation5 + $0x690] sm:$0xff]  ;;  %v135_v59 = vld [vmem:[#allocation5 + $0x218] sm:$0xff] }
  0xd0   :  { %986 = vmatpush2.msra.mxu0 %v314_v22  ;;  %922 = vmatprep.subr.mxu1 %v171_v23  ;;  %v275_v60 = vld [vmem:[#allocation5 + $0x678] sm:$0xff]  ;;  %v134_v61 = vld [vmem:[#allocation5 + $0x210] sm:$0xff] }
  0xd1   :  { %987 = vmatprep.subr.mxu0 %v311_v24  ;;  %923 = vmatpush2.msra.mxu1 %v170_v25  ;;  %v274_v62 = vld [vmem:[#allocation5 + $0x670] sm:$0xff]  ;;  %v271_v63 = vld [vmem:[#allocation5 + $0x658] sm:$0xff] }
  0xd2   :  { %988 = vmatpush2.msra.mxu0 %v310_v26  ;;  %924 = vmatprep.subr.mxu1 %v167_v27  ;;  %v387_v0 = vld [vmem:[#allocation5 + $0x9f8] sm:$0xff]  ;;  %v270_v3 = vld [vmem:[#allocation5 + $0x650] sm:$0xff] }
  0xd3   :  { %989 = vmatprep.subr.mxu0 %v307_v28  ;;  %925 = vmatpush2.msra.mxu1 %v166_v29  ;;  %v386_v4 = vld [vmem:[#allocation5 + $0x9f0] sm:$0xff]  ;;  %v267_v5 = vld [vmem:[#allocation5 + $0x638] sm:$0xff] }
  0xd4   :  { %990 = vmatpush2.msra.mxu0 %v306_v30  ;;  %926 = vmatprep.subr.mxu1 %v163_v31  ;;  %v383_v6 = vld [vmem:[#allocation5 + $0x9d8] sm:$0xff]  ;;  %v266_v7 = vld [vmem:[#allocation5 + $0x630] sm:$0xff] }
  0xd5   :  { %991 = vmatprep.subr.mxu0 %v303_v32  ;;  %927 = vmatpush2.msra.mxu1 %v162_v33  ;;  %v382_v8 = vld [vmem:[#allocation5 + $0x9d0] sm:$0xff]  ;;  %v263_v9 = vld [vmem:[#allocation5 + $0x618] sm:$0xff] }
  0xd6   :  { %992 = vmatpush2.msra.mxu0 %v302_v34  ;;  %928 = vmatprep.subr.mxu1 %v159_v35  ;;  %v379_v10 = vld [vmem:[#allocation5 + $0x9b8] sm:$0xff]  ;;  %v262_v11 = vld [vmem:[#allocation5 + $0x610] sm:$0xff] }
  0xd7   :  { %993 = vmatprep.subr.mxu0 %v299_v36  ;;  %929 = vmatpush2.msra.mxu1 %v158_v37  ;;  %v378_v12 = vld [vmem:[#allocation5 + $0x9b0] sm:$0xff]  ;;  %v375_v13 = vld [vmem:[#allocation5 + $0x998] sm:$0xff]  ;;  %v1901_v37 = vld [vmem:[%s2433_s4 + $0x8] sm:$0xff] }
  0xd8   :  { %994 = vmatpush2.msra.mxu0 %v298_v38  ;;  %930 = vmatprep.subr.mxu1 %v155_v39  ;;  %v1744_v14 = vld [vmem:[#allocation2 + $0x18] sm:$0xff]  ;;  %v374_v15 = vld [vmem:[#allocation5 + $0x990] sm:$0xff] }
  0xd9   :  { %995 = vmatprep.subr.mxu0 %v295_v40  ;;  %931 = vmatpush2.msra.mxu1 %v154_v41  ;;  %v514_v16 = vld [vmem:[#allocation5 + $0xdf0] sm:$0xff]  ;;  %v371_v18 = vld [vmem:[#allocation5 + $0x978] sm:$0xff]  ;;  %v1242_v41 = vmul.f32 %v1901_v37, %v1901_v37 }
  0xda   :  { %996 = vmatpush2.msra.mxu0 %v294_v42  ;;  %932 = vmatprep.subr.mxu1 %v151_v43  ;;  %v1745_v17 = vld [vmem:[#allocation2 + $0x10] sm:$0xff]  ;;  %v511_v19 = vld [vmem:[#allocation5 + $0xdd8] sm:$0xff]  ;;  %v1910_v42 = vld [vmem:[%s2433_s4] sm:$0xff] }
  0xdb   :  { %997 = vmatprep.subr.mxu0 %v291_v44  ;;  %933 = vmatpush2.msra.mxu1 %v150_v45  ;;  %v370_v20 = vld [vmem:[#allocation5 + $0x970] sm:$0xff]  ;;  %v367_v22 = vld [vmem:[#allocation5 + $0x958] sm:$0xff]  ;;  %v1241_v45 = vmul.f32 %v1910_v42, %v1910_v42 }
  0xdc   :  { %998 = vmatpush2.msra.mxu0 %v290_v46  ;;  %934 = vmatprep.subr.mxu1 %v147_v47  ;;  %v510_v21 = vld [vmem:[#allocation5 + $0xdd0] sm:$0xff]  ;;  %v507_v23 = vld [vmem:[#allocation5 + $0xdb8] sm:$0xff] }
  0xdd   :  { %999 = vmatprep.subr.mxu0 %v287_v48  ;;  %935 = vmatpush2.msra.mxu1 %v146_v49  ;;  %v366_v24 = vld [vmem:[#allocation5 + $0x950] sm:$0xff]  ;;  %v363_v26 = vld [vmem:[#allocation5 + $0x938] sm:$0xff]  ;;  %v1307_v48 = vsel %vm1305_vm1, %v1242_v41, 0.0 }
  0xde   :  { %1000 = vmatpush2.msra.mxu0 %v286_v50  ;;  %936 = vmatprep.subr.mxu1 %v143_v51  ;;  %v506_v25 = vld [vmem:[#allocation5 + $0xdb0] sm:$0xff]  ;;  %v503_v27 = vld [vmem:[#allocation5 + $0xd98] sm:$0xff] }
  0xdf   :  { %1001 = vmatprep.subr.mxu0 %v283_v52  ;;  %937 = vmatpush2.msra.mxu1 %v142_v53  ;;  %v362_v28 = vld [vmem:[#allocation5 + $0x930] sm:$0xff]  ;;  %v359_v30 = vld [vmem:[#allocation5 + $0x918] sm:$0xff]  ;;  %v1306_v52 = vsel %vm1305_vm1, %v1241_v45, 0.0 }
  0xe0   :  { %1002 = vmatpush2.msra.mxu0 %v282_v54  ;;  %938 = vmatprep.subr.mxu1 %v139_v55  ;;  %v502_v29 = vld [vmem:[#allocation5 + $0xd90] sm:$0xff]  ;;  %v499_v31 = vld [vmem:[#allocation5 + $0xd78] sm:$0xff] }
  0xe1   :  { %1003 = vmatprep.subr.mxu0 %v279_v56  ;;  %939 = vmatpush2.msra.mxu1 %v138_v57  ;;  %v358_v32 = vld [vmem:[#allocation5 + $0x910] sm:$0xff]  ;;  %v355_v34 = vld [vmem:[#allocation5 + $0x8f8] sm:$0xff]  ;;  %v1308_v57 = vadd.f32 %v1307_v48, %v1306_v52  ;;  %v1959_v52 = vld [vmem:[%s2433_s4 + $0x40] sm:$0xff] }
  0xe2   :  { %1004 = vmatpush2.msra.mxu0 %v278_v58  ;;  %940 = vmatprep.subr.mxu1 %v135_v59  ;;  %v498_v33 = vld [vmem:[#allocation5 + $0xd70] sm:$0xff]  ;;  %v495_v35 = vld [vmem:[#allocation5 + $0xd58] sm:$0xff] }
  0xe3   :  { %1005 = vmatprep.subr.mxu0 %v275_v60  ;;  %941 = vmatpush2.msra.mxu1 %v134_v61  ;;  %v1896_v36 = vld [vmem:[%s2433_s4 + $0x10] sm:$0xff]  ;;  %v351_v43 = vld [vmem:[#allocation5 + $0x8d8] sm:$0xff] }
  0xe4   :  { %942 = vmatprep.mubr.f32.mxu1 %v1743_v1  ;;  %1006 = vmatpush2.msra.mxu0 %v274_v62  ;;  %v354_v38 = vld [vmem:[#allocation5 + $0x8f0] sm:$0xff]  ;;  %v1243_v40 = vmul.f32 %v1896_v36, %v1896_v36  ;;  %v491_v44 = vld [vmem:[#allocation5 + $0xd38] sm:$0xff] }
  0xe5   :  { %943 = vmatmul.mubr.f32.vlgmr.msra.gmra.mxu1 %v1888_v2  ;;  %1007 = vmatprep.subr.mxu0 %v271_v63  ;;  %v515_v2 = vld [vmem:[#allocation5 + $0xdf8] sm:$0xff]  ;;  %v494_v39 = vld [vmem:[#allocation5 + $0xd50] sm:$0xff] }
  0xe6   :  { %1020 = vmatprep.subr.mxu1 %v387_v0  ;;  %1008 = vmatpush2.msra.mxu0 %v270_v3  ;;  %v350_v46 = vld [vmem:[#allocation5 + $0x8d0] sm:$0xff]  ;;  %v347_v49 = vld [vmem:[#allocation5 + $0x8b8] sm:$0xff]  ;;  %v1309_v56 = vsel %vm1305_vm1, %v1243_v40, 0.0  ;;  %v1927_v0 = vld [vmem:[%s2433_s4 + $0x20] sm:$0xff] }
  0xe7   :  { %1021 = vmatpush1.msra.mxu1 %v386_v4  ;;  %1009 = vmatprep.subr.mxu0 %v267_v5  ;;  %v490_v47 = vld [vmem:[#allocation5 + $0xd30] sm:$0xff]  ;;  %v487_v50 = vld [vmem:[#allocation5 + $0xd18] sm:$0xff]  ;;  %v1310_v1 = vadd.f32 %v1309_v56, %v1308_v57  ;;  %v1245_v5 = vmul.f32 %v1927_v0, %v1927_v0  ;;  %v1249_v56 = vmul.f32 %v1959_v52, %v1959_v52 }
  0xe8   :  { %1022 = vmatprep.subr.mxu1 %v383_v6  ;;  %1010 = vmatpush2.msra.mxu0 %v266_v7  ;;  %v1918_v51 = vld [vmem:[%s2433_s4 + $0x18] sm:$0xff]  ;;  %v346_v53 = vld [vmem:[#allocation5 + $0x8b0] sm:$0xff] }
  0xe9   :  { %1023 = vmatpush1.msra.mxu1 %v382_v8  ;;  %1011 = vmatprep.subr.mxu0 %v263_v9  ;;  %v486_v54 = vld [vmem:[#allocation5 + $0xd10] sm:$0xff]  ;;  %v1244_v55 = vmul.f32 %v1918_v51, %v1918_v51  ;;  %v343_v58 = vld [vmem:[#allocation5 + $0x898] sm:$0xff] }
  0xea   :  { %1024 = vmatprep.subr.mxu1 %v379_v10  ;;  %1012 = vmatpush2.msra.mxu0 %v262_v11  ;;  %v483_v59 = vld [vmem:[#allocation5 + $0xcf8] sm:$0xff]  ;;  %v342_v60 = vld [vmem:[#allocation5 + $0x890] sm:$0xff] }
  0xeb   :  { %1013 = vmatprep.mubr.f32.mxu0 %v1744_v14  ;;  %1025 = vmatpush1.msra.mxu1 %v378_v12  ;;  %v482_v61 = vld [vmem:[#allocation5 + $0xcf0] sm:$0xff]  ;;  %v339_v62 = vld [vmem:[#allocation5 + $0x878] sm:$0xff]  ;;  %v1311_v6 = vsel %vm1305_vm1, %v1244_v55, 0.0 }
  0xec   :  { %1014 = vmatmul.mubr.f32.vlgmr.msra.gmra.mxu0 %v1745_v17  ;;  %1026 = vmatprep.subr.mxu1 %v375_v13  ;;  %v479_v63 = vld [vmem:[#allocation5 + $0xcd8] sm:$0xff]  ;;  %v338_v3 = vld [vmem:[#allocation5 + $0x870] sm:$0xff]  ;;  %v1935_v13 = vld [vmem:[%s2433_s4 + $0x28] sm:$0xff]  ;;  %v1313_v17 = vsel %vm1305_vm1, %v1245_v5, 0.0 }
  0xed   :  { %1091 = vmatprep.subr.mxu0 %v515_v2  ;;  %1027 = vmatpush1.msra.mxu1 %v374_v15  ;;  %v478_v4 = vld [vmem:[#allocation5 + $0xcd0] sm:$0xff]  ;;  %v335_v7 = vld [vmem:[#allocation5 + $0x858] sm:$0xff]  ;;  %v1312_v2 = vadd.f32 %v1311_v6, %v1310_v1  ;;  %v1967_v1 = vld [vmem:[%s2433_s4 + $0x48] sm:$0xff] }
  0xee   :  { %1092 = vmatpush1.msra.mxu0 %v514_v16  ;;  %1028 = vmatprep.subr.mxu1 %v371_v18  ;;  %v475_v8 = vld [vmem:[#allocation5 + $0xcb8] sm:$0xff]  ;;  %v334_v9 = vld [vmem:[#allocation5 + $0x850] sm:$0xff]  ;;  %v1246_v16 = vmul.f32 %v1935_v13, %v1935_v13  ;;  %v1250_v6 = vmul.f32 %v1967_v1, %v1967_v1 }
  0xef   :  { %1093 = vmatprep.subr.mxu0 %v511_v19  ;;  %1029 = vmatpush1.msra.mxu1 %v370_v20  ;;  %v474_v10 = vld [vmem:[#allocation5 + $0xcb0] sm:$0xff]  ;;  %v331_v11 = vld [vmem:[#allocation5 + $0x838] sm:$0xff] }
  0xf0   :  { %1094 = vmatpush1.msra.mxu0 %v510_v21  ;;  %1030 = vmatprep.subr.mxu1 %v367_v22  ;;  %v471_v12 = vld [vmem:[#allocation5 + $0xc98] sm:$0xff]  ;;  %v330_v14 = vld [vmem:[#allocation5 + $0x830] sm:$0xff] }
  0xf1   :  { %1095 = vmatprep.subr.mxu0 %v507_v23  ;;  %1031 = vmatpush1.msra.mxu1 %v366_v24  ;;  %v470_v15 = vld [vmem:[#allocation5 + $0xc90] sm:$0xff]  ;;  %v327_v18 = vld [vmem:[#allocation5 + $0x818] sm:$0xff] }
  0xf2   :  { %1096 = vmatpush1.msra.mxu0 %v506_v25  ;;  %1032 = vmatprep.subr.mxu1 %v363_v26  ;;  %v467_v19 = vld [vmem:[#allocation5 + $0xc78] sm:$0xff]  ;;  %v326_v20 = vld [vmem:[#allocation5 + $0x810] sm:$0xff]  ;;  %v1314_v25 = vadd.f32 %v1313_v17, %v1312_v2 }
  0xf3   :  { %1097 = vmatprep.subr.mxu0 %v503_v27  ;;  %1033 = vmatpush1.msra.mxu1 %v362_v28  ;;  %v466_v21 = vld [vmem:[#allocation5 + $0xc70] sm:$0xff]  ;;  %v451_v22 = vld [vmem:[#allocation5 + $0xbf8] sm:$0xff] }
  0xf4   :  { %1098 = vmatpush1.msra.mxu0 %v502_v29  ;;  %1034 = vmatprep.subr.mxu1 %v359_v30  ;;  %v463_v23 = vld [vmem:[#allocation5 + $0xc58] sm:$0xff]  ;;  %v1943_v24 = vld [vmem:[%s2433_s4 + $0x30] sm:$0xff]  ;;  %v1315_v29 = vsel %vm1305_vm1, %v1246_v16, 0.0 }
  0xf5   :  { %1099 = vmatprep.subr.mxu0 %v499_v31  ;;  %1035 = vmatpush1.msra.mxu1 %v358_v32  ;;  %v450_v26 = vld [vmem:[#allocation5 + $0xbf0] sm:$0xff]  ;;  %v1247_v28 = vmul.f32 %v1943_v24, %v1943_v24  ;;  %v447_v30 = vld [vmem:[#allocation5 + $0xbd8] sm:$0xff] }
  0xf6   :  { %1100 = vmatpush1.msra.mxu0 %v498_v33  ;;  %1036 = vmatprep.subr.mxu1 %v355_v34  ;;  %v462_v27 = vld [vmem:[#allocation5 + $0xc50] sm:$0xff]  ;;  %v459_v31 = vld [vmem:[#allocation5 + $0xc38] sm:$0xff] }
  0xf7   :  { %1101 = vmatprep.subr.mxu0 %v495_v35  ;;  %1037 = vmatpush1.msra.mxu1 %v354_v38  ;;  %v446_v32 = vld [vmem:[#allocation5 + $0xbd0] sm:$0xff]  ;;  %v443_v34 = vld [vmem:[#allocation5 + $0xbb8] sm:$0xff] }
  0xf8   :  { %1102 = vmatpush1.msra.mxu0 %v494_v39  ;;  %1038 = vmatprep.subr.mxu1 %v351_v43  ;;  %v458_v33 = vld [vmem:[#allocation5 + $0xc30] sm:$0xff]  ;;  %v455_v35 = vld [vmem:[#allocation5 + $0xc18] sm:$0xff]  ;;  %v1316_v39 = vadd.f32 %v1315_v29, %v1314_v25 }
  0xf9   :  { %1103 = vmatprep.subr.mxu0 %v491_v44  ;;  %1039 = vmatpush1.msra.mxu1 %v350_v46  ;;  %v1951_v38 = vld [vmem:[%s2433_s4 + $0x38] sm:$0xff]  ;;  %v442_v40 = vld [vmem:[#allocation5 + $0xbb0] sm:$0xff]  ;;  %v1317_v44 = vsel %vm1305_vm1, %v1247_v28, 0.0 }
  0xfa   :  { %1104 = vmatpush1.msra.mxu0 %v490_v47  ;;  %1040 = vmatprep.subr.mxu1 %v347_v49  ;;  %v454_v41 = vld [vmem:[#allocation5 + $0xc10] sm:$0xff]  ;;  %v1248_v43 = vmul.f32 %v1951_v38, %v1951_v38  ;;  %v439_v45 = vld [vmem:[#allocation5 + $0xb98] sm:$0xff] }
  0xfb   :  { %1105 = vmatprep.subr.mxu0 %v487_v50  ;;  %1041 = vmatpush1.msra.mxu1 %v346_v53  ;;  %v567_v46 = vld [vmem:[#allocation5 + $0xf98] sm:$0xff]  ;;  %v438_v47 = vld [vmem:[#allocation5 + $0xb90] sm:$0xff]  ;;  %v1318_v53 = vadd.f32 %v1317_v44, %v1316_v39 }
  0xfc   :  { %1106 = vmatpush1.msra.mxu0 %v486_v54  ;;  %1042 = vmatprep.subr.mxu1 %v343_v58  ;;  %v566_v48 = vld [vmem:[#allocation5 + $0xf90] sm:$0xff]  ;;  %v435_v49 = vld [vmem:[#allocation5 + $0xb78] sm:$0xff]  ;;  %v1319_v57 = vsel %vm1305_vm1, %v1248_v43, 0.0  ;;  %v1991_v43 = vld [vmem:[%s2433_s4 + $0x60] sm:$0xff] }
  0xfd   :  { %1107 = vmatprep.subr.mxu0 %v483_v59  ;;  %1043 = vmatpush1.msra.mxu1 %v342_v60  ;;  %v563_v50 = vld [vmem:[#allocation5 + $0xf78] sm:$0xff]  ;;  %v434_v54 = vld [vmem:[#allocation5 + $0xb70] sm:$0xff] }
  0xfe   :  { %1108 = vmatpush1.msra.mxu0 %v482_v61  ;;  %1044 = vmatprep.subr.mxu1 %v339_v62  ;;  %v562_v55 = vld [vmem:[#allocation5 + $0xf70] sm:$0xff]  ;;  %v431_v58 = vld [vmem:[#allocation5 + $0xb58] sm:$0xff] }
  0xff   :  { %1109 = vmatprep.subr.mxu0 %v479_v63  ;;  %1045 = vmatpush1.msra.mxu1 %v338_v3  ;;  %v559_v59 = vld [vmem:[#allocation5 + $0xf58] sm:$0xff]  ;;  %v430_v60 = vld [vmem:[#allocation5 + $0xb50] sm:$0xff]  ;;  %v1320_v3 = vadd.f32 %v1319_v57, %v1318_v53  ;;  %v1190_v57 = vld [vmem:[%s2433_s4 + $0x68] sm:$0xff] }
 0x100   :  { %1110 = vmatpush1.msra.mxu0 %v478_v4  ;;  %1046 = vmatprep.subr.mxu1 %v335_v7  ;;  %v558_v61 = vld [vmem:[#allocation5 + $0xf50] sm:$0xff]  ;;  %v427_v62 = vld [vmem:[#allocation5 + $0xb38] sm:$0xff]  ;;  %v1321_v7 = vsel %vm1305_vm1, %v1249_v56, 0.0 }
 0x101   :  { %1111 = vmatprep.subr.mxu0 %v475_v8  ;;  %1047 = vmatpush1.msra.mxu1 %v334_v9  ;;  %v555_v63 = vld [vmem:[#allocation5 + $0xf38] sm:$0xff]  ;;  %v426_v4 = vld [vmem:[#allocation5 + $0xb30] sm:$0xff] }
 0x102   :  { %1112 = vmatpush1.msra.mxu0 %v474_v10  ;;  %1048 = vmatprep.subr.mxu1 %v331_v11  ;;  %v554_v5 = vld [vmem:[#allocation5 + $0xf30] sm:$0xff]  ;;  %v423_v8 = vld [vmem:[#allocation5 + $0xb18] sm:$0xff] }
 0x103   :  { %1113 = vmatprep.subr.mxu0 %v471_v12  ;;  %1049 = vmatpush1.msra.mxu1 %v330_v14  ;;  %v551_v9 = vld [vmem:[#allocation5 + $0xf18] sm:$0xff]  ;;  %v422_v10 = vld [vmem:[#allocation5 + $0xb10] sm:$0xff] }
 0x104   :  { %1114 = vmatpush1.msra.mxu0 %v470_v15  ;;  %1050 = vmatprep.subr.mxu1 %v327_v18  ;;  %v550_v11 = vld [vmem:[#allocation5 + $0xf10] sm:$0xff]  ;;  %v419_v12 = vld [vmem:[#allocation5 + $0xaf8] sm:$0xff]  ;;  %v1322_v15 = vadd.f32 %v1321_v7, %v1320_v3 }
 0x105   :  { %1115 = vmatprep.subr.mxu0 %v467_v19  ;;  %1051 = vmatpush1.msra.mxu1 %v326_v20  ;;  %v547_v2 = vld [vmem:[#allocation5 + $0xef8] sm:$0xff]  ;;  %v1975_v14 = vld [vmem:[%s2433_s4 + $0x50] sm:$0xff]  ;;  %v1323_v19 = vsel %vm1305_vm1, %v1250_v6, 0.0 }
 0x106   :  { %1116 = vmatpush1.msra.mxu0 %v466_v21  ;;  %1052 = vmatprep.subr.mxu1 %v451_v22  ;;  %v418_v16 = vld [vmem:[#allocation5 + $0xaf0] sm:$0xff]  ;;  %v1251_v18 = vmul.f32 %v1975_v14, %v1975_v14  ;;  %v415_v20 = vld [vmem:[#allocation5 + $0xad8] sm:$0xff]  ;;  %v1324_v28 = vadd.f32 %v1323_v19, %v1322_v15  ;;  %v1748_v15 = vld [vmem:[#allocation2 + $0x20] sm:$0xff] }
 0x107   :  { %1117 = vmatprep.subr.mxu0 %v463_v23  ;;  %1053 = vmatpush2.msra.mxu1 %v450_v26  ;;  %v546_v17 = vld [vmem:[#allocation5 + $0xef0] sm:$0xff]  ;;  %v543_v21 = vld [vmem:[#allocation5 + $0xed8] sm:$0xff] }
 0x108   :  { %1118 = vmatpush1.msra.mxu0 %v462_v27  ;;  %1054 = vmatprep.subr.mxu1 %v447_v30  ;;  %v414_v22 = vld [vmem:[#allocation5 + $0xad0] sm:$0xff]  ;;  %v411_v25 = vld [vmem:[#allocation5 + $0xab8] sm:$0xff] }
 0x109   :  { %1119 = vmatprep.subr.mxu0 %v459_v31  ;;  %1055 = vmatpush2.msra.mxu1 %v446_v32  ;;  %v542_v23 = vld [vmem:[#allocation5 + $0xed0] sm:$0xff]  ;;  %v539_v26 = vld [vmem:[#allocation5 + $0xeb8] sm:$0xff]  ;;  %v1325_v32 = vsel %vm1305_vm1, %v1251_v18, 0.0 }
 0x10a   :  { %1120 = vmatpush1.msra.mxu0 %v458_v33  ;;  %1056 = vmatprep.subr.mxu1 %v443_v34  ;;  %v1983_v27 = vld [vmem:[%s2433_s4 + $0x58] sm:$0xff]  ;;  %v410_v29 = vld [vmem:[#allocation5 + $0xab0] sm:$0xff]  ;;  %v1326_v44 = vadd.f32 %v1325_v32, %v1324_v28 }
 0x10b   :  { %1121 = vmatprep.subr.mxu0 %v455_v35  ;;  %1057 = vmatpush2.msra.mxu1 %v442_v40  ;;  %v538_v30 = vld [vmem:[#allocation5 + $0xeb0] sm:$0xff]  ;;  %v1252_v31 = vmul.f32 %v1983_v27, %v1983_v27  ;;  %v407_v33 = vld [vmem:[#allocation5 + $0xa98] sm:$0xff] }
 0x10c   :  { %1122 = vmatpush1.msra.mxu0 %v454_v41  ;;  %1058 = vmatprep.subr.mxu1 %v439_v45  ;;  %v535_v34 = vld [vmem:[#allocation5 + $0xe98] sm:$0xff]  ;;  %v406_v35 = vld [vmem:[#allocation5 + $0xa90] sm:$0xff] }
 0x10d   :  { %1129 = vmatprep.subr.mxu0 %v567_v46  ;;  %1059 = vmatpush2.msra.mxu1 %v438_v47  ;;  %v534_v39 = vld [vmem:[#allocation5 + $0xe90] sm:$0xff]  ;;  %v403_v40 = vld [vmem:[#allocation5 + $0xa78] sm:$0xff]  ;;  %v1253_v47 = vmul.f32 %v1991_v43, %v1991_v43 }
 0x10e   :  { %1130 = vmatpush2.msra.mxu0 %v566_v48  ;;  %1060 = vmatprep.subr.mxu1 %v435_v49  ;;  %v531_v41 = vld [vmem:[#allocation5 + $0xe78] sm:$0xff]  ;;  %v402_v45 = vld [vmem:[#allocation5 + $0xa70] sm:$0xff]  ;;  %v1327_v48 = vsel %vm1305_vm1, %v1252_v31, 0.0 }
 0x10f   :  { %1131 = vmatprep.subr.mxu0 %v563_v50  ;;  %1061 = vmatpush2.msra.mxu1 %v434_v54  ;;  %v530_v46 = vld [vmem:[#allocation5 + $0xe70] sm:$0xff]  ;;  %v399_v49 = vld [vmem:[#allocation5 + $0xa58] sm:$0xff] }
 0x110   :  { %1132 = vmatpush2.msra.mxu0 %v562_v55  ;;  %1062 = vmatprep.subr.mxu1 %v431_v58  ;;  %v527_v50 = vld [vmem:[#allocation5 + $0xe58] sm:$0xff]  ;;  %v398_v53 = vld [vmem:[#allocation5 + $0xa50] sm:$0xff]  ;;  %v1328_v58 = vadd.f32 %v1327_v48, %v1326_v44  ;;  %v2092_v44 = vld [vmem:[%s2433_s4 + $0xc8] sm:$0xff] }
 0x111   :  { %1133 = vmatprep.subr.mxu0 %v559_v59  ;;  %1063 = vmatpush2.msra.mxu1 %v430_v60  ;;  %v526_v54 = vld [vmem:[#allocation5 + $0xe50] sm:$0xff]  ;;  %v395_v55 = vld [vmem:[#allocation5 + $0xa38] sm:$0xff] }
 0x112   :  { %1134 = vmatpush2.msra.mxu0 %v558_v61  ;;  %1064 = vmatprep.subr.mxu1 %v427_v62  ;;  %v523_v56 = vld [vmem:[#allocation5 + $0xe38] sm:$0xff]  ;;  %v394_v59 = vld [vmem:[#allocation5 + $0xa30] sm:$0xff]  ;;  %v1254_v61 = vmul.f32 %v1190_v57, %v1190_v57  ;;  %v1329_v62 = vsel %vm1305_vm1, %v1253_v47, 0.0 }
 0x113   :  { %1135 = vmatprep.subr.mxu0 %v555_v63  ;;  %1065 = vmatpush2.msra.mxu1 %v426_v4  ;;  %v522_v60 = vld [vmem:[#allocation5 + $0xe30] sm:$0xff]  ;;  %v391_v63 = vld [vmem:[#allocation5 + $0xa18] sm:$0xff]  ;;  %v1330_v7 = vadd.f32 %v1329_v62, %v1328_v58  ;;  %v1198_v62 = vld [vmem:[%s2433_s4 + $0xa8] sm:$0xff] }
 0x114   :  { %1136 = vmatpush2.msra.mxu0 %v554_v5  ;;  %1066 = vmatprep.subr.mxu1 %v423_v8  ;;  %v519_v3 = vld [vmem:[#allocation5 + $0xe18] sm:$0xff]  ;;  %v390_v4 = vld [vmem:[#allocation5 + $0xa10] sm:$0xff] }
 0x115   :  { %1137 = vmatprep.subr.mxu0 %v551_v9  ;;  %1067 = vmatpush2.msra.mxu1 %v422_v10  ;;  %v518_v5 = vld [vmem:[#allocation5 + $0xe10] sm:$0xff]  ;;  %v1331_v9 = vsel %vm1305_vm1, %v1254_v61, 0.0  ;;  %v1746_v10 = vld [vmem:[#allocation2 + $0x28] sm:$0xff]  ;;  %v2054_v31 = vld [vmem:[%s2433_s4 + $0x178] sm:$0xff] }
 0x116   :  { %1138 = vmatpush2.msra.mxu0 %v550_v11  ;;  %1068 = vmatprep.subr.mxu1 %v419_v12  ;;  %v1191_v6 = vld [vmem:[%s2433_s4 + $0x70] sm:$0xff]  ;;  %v2007_v11 = vld [vmem:[%s2433_s4 + $0xf8] sm:$0xff]  ;;  %v1332_v18 = vadd.f32 %v1331_v9, %v1330_v7  ;;  %v2168_v61 = vld [vmem:[%s2433_s4 + $0x1c8] sm:$0xff] }
 0x117   :  { %1139 = vmatprep.subr.mxu0 %v547_v2  ;;  %1069 = vmatpush2.msra.mxu1 %v418_v16  ;;  %v1255_v8 = vmul.f32 %v1191_v6, %v1191_v6  ;;  %v1747_v12 = vld [vmem:[#allocation2 + $0x38] sm:$0xff]  ;;  %v1749_v16 = vld [vmem:[#allocation2 + $0x30] sm:$0xff] }
 0x118   :  { %1140 = vmatpush2.msra.mxu0 %v546_v17  ;;  %1070 = vmatprep.subr.mxu1 %v415_v20  ;;  %v1192_v2 = vld [vmem:[%s2433_s4 + $0x78] sm:$0xff]  ;;  %v2016_v17 = vld [vmem:[%s2433_s4 + $0xf0] sm:$0xff] }
 0x119   :  { %1141 = vmatprep.subr.mxu0 %v543_v21  ;;  %1071 = vmatpush2.msra.mxu1 %v414_v22  ;;  %v1256_v19 = vmul.f32 %v1192_v2, %v1192_v2  ;;  %v1333_v20 = vsel %vm1305_vm1, %v1255_v8, 0.0  ;;  %v2023_v21 = vld [vmem:[%s2433_s4 + $0xe8] sm:$0xff]  ;;  %v2029_v22 = vld [vmem:[%s2433_s4 + $0xe0] sm:$0xff]  ;;  %v2059_v32 = vld [vmem:[%s2433_s4 + $0x1f0] sm:$0xff] }
 0x11a   :  { %1142 = vmatpush2.msra.mxu0 %v542_v23  ;;  %1072 = vmatprep.subr.mxu1 %v411_v25  ;;  %v2034_v23 = vld [vmem:[%s2433_s4 + $0x80] sm:$0xff]  ;;  %v1334_v25 = vadd.f32 %v1333_v20, %v1332_v18  ;;  %v1195_v47 = vld [vmem:[%s2433_s4 + $0x90] sm:$0xff]  ;;  %v2208_v8 = vld [vmem:[%s2433_s4 + $0x138] sm:$0xff] }
 0x11b   :  { %1143 = vmatprep.subr.mxu0 %v539_v26  ;;  %1073 = vmatpush2.msra.mxu1 %v410_v29  ;;  %v1335_v26 = vsel %vm1305_vm1, %v1256_v19, 0.0  ;;  %v1257_v28 = vmul.f32 %v2034_v23, %v2034_v23  ;;  %v2043_v29 = vld [vmem:[%s2433_s4 + $0xd8] sm:$0xff]  ;;  %v2214_v9 = vld [vmem:[%s2433_s4 + $0x1b0] sm:$0xff] }
 0x11c   :  { %1144 = vmatpush2.msra.mxu0 %v538_v30  ;;  %1074 = vmatprep.subr.mxu1 %v407_v33  ;;  %v2049_v30 = vld [vmem:[%s2433_s4 + $0x1f8] sm:$0xff]  ;;  %v2065_v33 = vld [vmem:[%s2433_s4 + $0xd0] sm:$0xff] }
 0x11d   :  { %1145 = vmatprep.subr.mxu0 %v535_v34  ;;  %1075 = vmatpush2.msra.mxu1 %v406_v35  ;;  %v2070_v34 = vld [vmem:[%s2433_s4 + $0x88] sm:$0xff]  ;;  %v1336_v35 = vadd.f32 %v1335_v26, %v1334_v25 }
 0x11e   :  { %1146 = vmatpush2.msra.mxu0 %v534_v39  ;;  %1076 = vmatprep.subr.mxu1 %v403_v40  ;;  %v2076_v39 = vld [vmem:[%s2433_s4 + $0x170] sm:$0xff]  ;;  %v1258_v40 = vmul.f32 %v2070_v34, %v2070_v34 }
 0x11f   :  { %1147 = vmatprep.subr.mxu0 %v531_v41  ;;  %1077 = vmatpush2.msra.mxu1 %v402_v45  ;;  %v1337_v41 = vsel %vm1305_vm1, %v1257_v28, 0.0  ;;  %v2098_v45 = vld [vmem:[%s2433_s4 + $0x168] sm:$0xff] }
 0x120   :  { %1148 = vmatpush2.msra.mxu0 %v530_v46  ;;  %1078 = vmatprep.subr.mxu1 %v399_v49  ;;  %v2111_v46 = vld [vmem:[%s2433_s4 + $0xc0] sm:$0xff]  ;;  %v1338_v48 = vadd.f32 %v1337_v41, %v1336_v35 }
 0x121   :  { %1149 = vmatprep.subr.mxu0 %v527_v50  ;;  %1079 = vmatpush2.msra.mxu1 %v398_v53  ;;  %v2120_v49 = vld [vmem:[%s2433_s4 + $0x160] sm:$0xff]  ;;  %v1339_v50 = vsel %vm1305_vm1, %v1258_v40, 0.0  ;;  %v2128_v53 = vld [vmem:[%s2433_s4 + $0x1d8] sm:$0xff]  ;;  %v1265_v26 = vmul.f32 %v2111_v46, %v2111_v46  ;;  %v570_v40 = vlaneseq }
 0x122   :  { %1150 = vmatpush2.msra.mxu0 %v526_v54  ;;  %1080 = vmatprep.subr.mxu1 %v395_v55  ;;  %v2134_v54 = vld [vmem:[%s2433_s4 + $0xb8] sm:$0xff]  ;;  %v1340_v58 = vadd.f32 %v1339_v50, %v1338_v48 }
 0x123   :  { %1151 = vmatprep.subr.mxu0 %v523_v56  ;;  %1081 = vmatpush2.msra.mxu1 %v394_v59  ;;  %v2140_v55 = vld [vmem:[%s2433_s4 + $0x158] sm:$0xff]  ;;  %v1199_v56 = vld [vmem:[%s2433_s4 + $0xb0] sm:$0xff]  ;;  %v2259_v48 = vshrl.u32 %v570_v40, 7 }
 0x124   :  { %1152 = vmatpush2.msra.mxu0 %v522_v60  ;;  %1082 = vmatprep.subr.mxu1 %v391_v63  ;;  %v2160_v59 = vld [vmem:[%s2433_s4 + $0x150] sm:$0xff]  ;;  %v2178_v63 = vld [vmem:[%s2433_s4 + $0x148] sm:$0xff]  ;;  %v1263_v18 = vmul.f32 %v1199_v56, %v1199_v56 }
 0x125   :  { %1153 = vmatprep.subr.mxu0 %v519_v3  ;;  %1083 = vmatpush2.msra.mxu1 %v390_v4  ;;  %v2184_v3 = vld [vmem:[%s2433_s4 + $0x1c0] sm:$0xff] }
 0x126   :  { %1084 = vmatprep.mubr.f32.mxu1 %v1746_v10  ;;  %1154 = vmatpush2.msra.mxu0 %v518_v5  ;;  %v2194_v5 = vld [vmem:[%s2433_s4 + $0x140] sm:$0xff]  ;;  %v1349_v20 = vsel %vm1305_vm1, %v1263_v18, 0.0 }
 0x127   :  { %1651 = vmatprep.mubr.msk.f32.mxu0 %vm590_vm0, %v1747_v12  ;;  %1085 = vmatmul.mubr.f32.vlgmr.msra.gmra.mxu1 %v1748_v15  ;;  %v1262_v12 = vmul.f32 %v1198_v62, %v1198_v62  ;;  %v2228_v15 = vld [vmem:[%s2433_s4 + $0x1a8] sm:$0xff] }
 0x128   :  { %1156 = vmatmul.mubr.f32.vlgmr.msra.gmra.mxu0 %v1749_v16  ;;  %1654 = vmatprep.subr.mxu0 %v2007_v11 }
 0x129   :  { %1655 = vmatpush3.msra.mxu0 %v1192_v2  ;;  %1689 = vmatprep.subr.mxu1 %v2049_v30  ;;  %v1347_v19 = vsel %vm1305_vm1, %v1262_v12, 0.0 }
 0x12a   :  { %1656 = vmatprep.subr.mxu0 %v2016_v17  ;;  %1690 = vmatpush3.msra.mxu1 %v2054_v31 }
 0x12b   :  { %1657 = vmatpush3.msra.mxu0 %v1191_v6  ;;  %1691 = vmatprep.subr.mxu1 %v2059_v32 }
 0x12c   :  { %1658 = vmatprep.subr.mxu0 %v2023_v21  ;;  %1692 = vmatpush3.msra.mxu1 %v2076_v39 }
 0x12d   :  { %1659 = vmatpush3.msra.mxu0 %v1190_v57  ;;  %v1196_v57 = vld [vmem:[%s2433_s4 + $0x98] sm:$0xff] }
 0x12e   :  { %1660 = vmatprep.subr.mxu0 %v2029_v22  ;;  %v1260_v60 = vmul.f32 %v1196_v57, %v1196_v57 }
 0x12f   :  { %1661 = vmatpush3.msra.mxu0 %v1991_v43  ;;  %v2086_v43 = vld [vmem:[%s2433_s4 + $0x1e8] sm:$0xff] }
 0x130   :  { %1662 = vmatprep.subr.mxu0 %v2043_v29  ;;  %1693 = vmatprep.subr.mxu1 %v2086_v43  ;;  %v1343_v7 = vsel %vm1305_vm1, %v1260_v60, 0.0 }
 0x131   :  { %1663 = vmatpush3.msra.mxu0 %v1983_v27  ;;  %v2105_v27 = vld [vmem:[%s2433_s4 + $0x1e0] sm:$0xff]  ;;  %1694 = vmatpush3.msra.mxu1 %v2098_v45 }
 0x132   :  { %1664 = vmatprep.subr.mxu0 %v2065_v33  ;;  %1695 = vmatprep.subr.mxu1 %v2105_v27 }
 0x133   :  { %1665 = vmatpush3.msra.mxu0 %v1975_v14  ;;  %v1259_v14 = vmul.f32 %v1195_v47, %v1195_v47  ;;  %1696 = vmatpush3.msra.mxu1 %v2120_v49 }
 0x134   :  { %1666 = vmatprep.subr.mxu0 %v2092_v44  ;;  %1697 = vmatprep.subr.mxu1 %v2128_v53 }
 0x135   :  { %1667 = vmatpush3.msra.mxu0 %v1967_v1  ;;  %v2147_v1 = vld [vmem:[%s2433_s4 + $0x1d0] sm:$0xff]  ;;  %1698 = vmatpush3.msra.mxu1 %v2140_v55 }
 0x136   :  { %1668 = vmatprep.subr.mxu0 %v2111_v46  ;;  %1699 = vmatprep.subr.mxu1 %v2147_v1  ;;  %v1268_v46 = vmul.f32 %v2043_v29, %v2043_v29  ;;  %v1270_v29 = vmul.f32 %v2023_v21, %v2023_v21 }
 0x137   :  { %1669 = vmatpush3.msra.mxu0 %v1959_v52  ;;  %v1341_v52 = vsel %vm1305_vm1, %v1259_v14, 0.0  ;;  %1700 = vmatpush3.msra.mxu1 %v2160_v59 }
 0x138   :  { %1670 = vmatprep.subr.mxu0 %v2134_v54  ;;  %v1342_v4 = vadd.f32 %v1341_v52, %v1340_v58  ;;  %1701 = vmatprep.subr.mxu1 %v2168_v61  ;;  %v660_v58 = vpop.f32.mrf.mxu0  ;;  %v1363_v12 = vsel %vm1305_vm1, %v1270_v29, 0.0 }
 0x139   :  { %1671 = vmatpush3.msra.mxu0 %v1951_v38  ;;  %v1197_v38 = vld [vmem:[%s2433_s4 + $0xa0] sm:$0xff]  ;;  %1702 = vmatpush3.msra.mxu1 %v2178_v63 }
 0x13a   :  { %1672 = vmatprep.subr.mxu0 %v1199_v56  ;;  %v1261_v6 = vmul.f32 %v1197_v38, %v1197_v38  ;;  %1703 = vmatprep.subr.mxu1 %v2184_v3  ;;  %v1344_v10 = vadd.f32 %v1343_v7, %v1342_v4  ;;  %v1359_v56 = vsel %vm1305_vm1, %v1268_v46, 0.0  ;;  %v731_v4 = vpop.f32.mrf.mxu1 }
 0x13b   :  { %1673 = vmatpush3.msra.mxu0 %v1943_v24  ;;  %v2201_v24 = vld [vmem:[%s2433_s4 + $0x1b8] sm:$0xff]  ;;  %1704 = vmatpush3.msra.mxu1 %v2194_v5 }
 0x13c   :  { %1674 = vmatprep.subr.mxu0 %v1198_v62  ;;  %1705 = vmatprep.subr.mxu1 %v2201_v24  ;;  %v1345_v2 = vsel %vm1305_vm1, %v1261_v6, 0.0  ;;  %v662_v6 = vpop.f32.mrf.mxu0  ;;  %v733_v21 = vpop.f32.mrf.mxu1 }
 0x13d   :  { %1675 = vmatpush3.msra.mxu0 %v1935_v13  ;;  %v2221_v13 = vld [vmem:[%s2433_s4 + $0x130] sm:$0xff]  ;;  %1706 = vmatpush3.msra.mxu1 %v2208_v8  ;;  %v1346_v16 = vadd.f32 %v1345_v2, %v1344_v10  ;;  %v1271_v10 = vmul.f32 %v2016_v17, %v2016_v17  ;;  %v1272_v17 = vmul.f32 %v2007_v11, %v2007_v11 }
 0x13e   :  { %1676 = vmatprep.subr.mxu0 %v1197_v38  ;;  %1707 = vmatprep.subr.mxu1 %v2214_v9  ;;  %v2303_v11 = vld [vmem:[%s2433_s4 + $0x190] sm:$0xff] }
 0x13f   :  { %1677 = vmatpush3.msra.mxu0 %v1927_v0  ;;  %v2235_v0 = vld [vmem:[%s2433_s4 + $0x128] sm:$0xff]  ;;  %1708 = vmatpush3.msra.mxu1 %v2221_v13 }
 0x140   :  { %1678 = vmatprep.subr.mxu0 %v1196_v57  ;;  %1709 = vmatprep.subr.mxu1 %v2228_v15  ;;  %v576_v57 = vsub.s32 1, %v2259_v48 }
 0x141   :  { %1679 = vmatpush3.msra.mxu0 %v1918_v51  ;;  %1710 = vmatpush3.msra.mxu1 %v2235_v0  ;;  %v1348_v51 = vadd.f32 %v1347_v19, %v1346_v16  ;;  %v2282_v16 = vld [vmem:[%s2433_s4 + $0x1a0] sm:$0xff] }
 0x142   :  { %1680 = vmatprep.subr.mxu0 %v1195_v47  ;;  %1711 = vmatprep.subr.mxu1 %v2282_v16  ;;  %v1213_v19 = vld [vmem:[%s2433_s4 + $0x120] sm:$0xff] }
 0x143   :  { %1681 = vmatpush3.msra.mxu0 %v1896_v36  ;;  %v1264_v36 = vmul.f32 %v2134_v54, %v2134_v54  ;;  %v1350_v25 = vadd.f32 %v1349_v20, %v1348_v51  ;;  %v1269_v54 = vmul.f32 %v2029_v22, %v2029_v22  ;;  %1712 = vmatpush3.msra.mxu1 %v1213_v19  ;;  %v2294_v20 = vld [vmem:[%s2433_s4 + $0x198] sm:$0xff] }
 0x144   :  { %1682 = vmatprep.subr.mxu0 %v2070_v34  ;;  %1713 = vmatprep.subr.mxu1 %v2294_v20 }
 0x145   :  { %1683 = vmatpush3.msra.mxu0 %v1901_v37  ;;  %v1351_v28 = vsel %vm1305_vm1, %v1264_v36, 0.0  ;;  %v1266_v37 = vmul.f32 %v2092_v44, %v2092_v44  ;;  %v572_v44 = vsub.s32 0, %v2259_v48  ;;  %v1361_v62 = vsel %vm1305_vm1, %v1269_v54, 0.0 }
 0x146   :  { %1684 = vmatprep.subr.mxu0 %v2034_v23  ;;  %v1352_v34 = vadd.f32 %v1351_v28, %v1350_v25  ;;  %v1353_v23 = vsel %vm1305_vm1, %v1265_v26, 0.0  ;;  %v1365_v36 = vsel %vm1305_vm1, %v1271_v10, 0.0  ;;  %v1212_v28 = vld [vmem:[%s2433_s4 + $0x118] sm:$0xff] }
 0x147   :  { %1685 = vmatpush3.msra.mxu0 %v1910_v42  ;;  %v1267_v42 = vmul.f32 %v2065_v33, %v2065_v33  ;;  %v1355_v41 = vsel %vm1305_vm1, %v1266_v37, 0.0  ;;  %v2268_v33 = vld [vmem:[#allocation7] sm:$0xf]  ;;  %1714 = vmatpush3.msra.mxu1 %v1212_v28 }
 0x148   :  { %v1354_v35 = vadd.f32 %v1353_v23, %v1352_v34  ;;  %v573_v52 = vrot.slane %v2268_v33, %v572_v44  ;;  %v577_v38 = vrot.slane %v2268_v33, %v576_v57  ;;  %1715 = vmatprep.subr.mxu1 %v2303_v11  ;;  %v1210_v44 = vld [vmem:[%s2433_s4 + $0x108] sm:$0xff]  ;;  %v1209_v57 = vld [vmem:[%s2433_s4 + $0x100] sm:$0xff] }
 0x149   :  { %v1357_v14 = vsel %vm1305_vm1, %v1267_v42, 0.0  ;;  %v1211_v42 = vld [vmem:[%s2433_s4 + $0x110] sm:$0xff] }
 0x14a   :  { %v1356_v47 = vadd.f32 %v1355_v41, %v1354_v35  ;;  %v661_v7 = vadd.f32 %v660_v58, %v573_v52  ;;  %v663_v2 = vadd.f32 %v662_v6, %v577_v38  ;;  %v1367_v41 = vsel %vm1305_vm1, %v1272_v17, 0.0  ;;  %1716 = vmatpush3.msra.mxu1 %v1211_v42  ;;  %v1225_v58 = vld [vmem:[%s2433_s4 + $0x180] sm:$0xff] }
 0x14b   :  { %v1273_v52 = vmul.f32 %v1209_v57, %v1209_v57  ;;  %v1274_v38 = vmul.f32 %v1210_v44, %v1210_v44  ;;  %v1278_v17 = vmul.f32 %v2235_v0, %v2235_v0 }
 0x14c   :  { %v1358_v50 = vadd.f32 %v1357_v14, %v1356_v47  ;;  %v732_v51 = vadd.f32 %v731_v4, %v661_v7  ;;  %v734_v34 = vadd.f32 %v733_v21, %v663_v2  ;;  %v2313_v14 = vld [vmem:[%s2433_s4 + $0x188] sm:$0xff]  ;;  %v1277_v2 = vmul.f32 %v1213_v19, %v1213_v19 }
 0x14d   :  { %1717 = vmatprep.subr.mxu1 %v2313_v14  ;;  %v1369_v7 = vsel %vm1305_vm1, %v1273_v52, 0.0  ;;  %v1280_v19 = vmul.f32 %v2208_v8, %v2208_v8 }
 0x14e   :  { %v1360_v60 = vadd.f32 %v1359_v56, %v1358_v50  ;;  %1718 = vmatpush3.msra.mxu1 %v1210_v44  ;;  %v1284_v44 = vmul.f32 %v2140_v55, %v2140_v55 }
 0x14f   :  { %1719 = vmatprep.subr.mxu1 %v1225_v58 }
 0x150   :  { %v1362_v22 = vadd.f32 %v1361_v62, %v1360_v60  ;;  %1720 = vmatpush3.msra.mxu1 %v1209_v57  ;;  %v1276_v62 = vmul.f32 %v1212_v28, %v1212_v28  ;;  %v1377_v28 = vsel %vm1305_vm1, %v1277_v2, 0.0 }
 0x152   :  { %v1364_v18 = vadd.f32 %v1363_v12, %v1362_v22  ;;  %v1275_v22 = vmul.f32 %v1211_v42, %v1211_v42  ;;  %v1371_v12 = vsel %vm1305_vm1, %v1274_v38, 0.0  ;;  %v1288_v38 = vmul.f32 %v2054_v31, %v2054_v31 }
 0x153   :  { %v1292_v31 = vmul.f32 %v2294_v20, %v2294_v20 }
 0x154   :  { %v1366_v35 = vadd.f32 %v1365_v36, %v1364_v18  ;;  %v1373_v21 = vsel %vm1305_vm1, %v1275_v22, 0.0  ;;  %v1375_v36 = vsel %vm1305_vm1, %v1276_v62, 0.0  ;;  %v1289_v22 = vmul.f32 %v1225_v58, %v1225_v58 }
 0x155   :  { %v1293_v58 = vmul.f32 %v2282_v16, %v2282_v16 }
 0x156   :  { %v1368_v60 = vadd.f32 %v1367_v41, %v1366_v35  ;;  %v1281_v35 = vmul.f32 %v2194_v5, %v2194_v5  ;;  %v1282_v41 = vmul.f32 %v2178_v63, %v2178_v63  ;;  %v1401_v2 = vsel %vm1305_vm1, %v1289_v22, 0.0 }
 0x157   :  { %v1409_v20 = vsel %vm1305_vm1, %v1293_v58, 0.0  ;;  %v1586_v58 = vld [vmem:[%s2430_s1] sm:$0xff] }
 0x158   :  { %v1370_v10 = vadd.f32 %v1369_v7, %v1368_v60  ;;  %v1385_v8 = vsel %vm1305_vm1, %v1281_v35, 0.0  ;;  %v1387_v5 = vsel %vm1305_vm1, %v1282_v41, 0.0  ;;  %v1286_v60 = vmul.f32 %v2098_v45, %v2098_v45 }
 0x159   :  { %v1399_v45 = vsel %vm1305_vm1, %v1288_v38, 0.0  ;;  %v1299_v41 = vmul.f32 %v2147_v1, %v2147_v1 }
 0x163   :  { %v873_v25 = vpop.f32.mrf.mxu1 }
 0x165   :  { %v875_v50 = vpop.f32.mrf.mxu1 }
 0x16a   :  { %v802_v26 = vpop.f32.mrf.mxu0 }
 0x16b   :  { %v803_v37 = vadd.f32 %v802_v26, %v732_v51  ;;  %v1372_v51 = vadd.f32 %v1371_v12, %v1370_v10  ;;  %v1279_v26 = vmul.f32 %v2221_v13, %v2221_v13  ;;  %v1383_v13 = vsel %vm1305_vm1, %v1280_v19, 0.0 }
 0x16c   :  { %v804_v23 = vpop.f32.mrf.mxu0  ;;  %v1290_v10 = vmul.f32 %v2313_v14, %v2313_v14  ;;  %v1294_v14 = vmul.f32 %v2228_v15, %v2228_v15  ;;  %v1296_v19 = vmul.f32 %v2201_v24, %v2201_v24 }
 0x16d   :  { %v874_v47 = vadd.f32 %v873_v25, %v803_v37  ;;  %v805_v46 = vadd.f32 %v804_v23, %v734_v34  ;;  %v1374_v25 = vadd.f32 %v1373_v21, %v1372_v51  ;;  %v1379_v37 = vsel %vm1305_vm1, %v1278_v17, 0.0 }
 0x16e   :  { %v1381_v0 = vsel %vm1305_vm1, %v1279_v26, 0.0  ;;  %v1403_v51 = vsel %vm1305_vm1, %v1290_v10, 0.0  ;;  %v1411_v16 = vsel %vm1305_vm1, %v1294_v14, 0.0  ;;  %v1304_v14 = vmul.f32 %v2049_v30, %v2049_v30 }
 0x16f   :  { %v1162_v54 = vmax.f32 %v874_v47, 0.0  ;;  %v876_v56 = vadd.f32 %v875_v50, %v805_v46  ;;  %v1376_v34 = vadd.f32 %v1375_v36, %v1374_v25  ;;  %v1283_v46 = vmul.f32 %v2160_v59, %v2160_v59 }
 0x170   :  { %v1391_v59 = vsel %vm1305_vm1, %v1284_v44, 0.0 }
 0x171   :  { %v1163_v29 = vmax.f32 %v876_v56, 0.0  ;;  %v1166_v4 = vmul.f32 %v1162_v54, %v1162_v54  ;;  %v1378_v23 = vadd.f32 %v1377_v28, %v1376_v34  ;;  %v1285_v56 = vmul.f32 %v2120_v49, %v2120_v49 }
 0x172   :  { %v1389_v63 = vsel %vm1305_vm1, %v1283_v46, 0.0  ;;  %v1395_v49 = vsel %vm1305_vm1, %v1286_v60, 0.0  ;;  %v1295_v28 = vmul.f32 %v2214_v9, %v2214_v9  ;;  %v1415_v9 = vsel %vm1305_vm1, %v1296_v19, 0.0 }
 0x173   :  { %v1167_v6 = vmul.f32 %v1163_v29, %v1163_v29  ;;  %1505 = vmatprep.mubr.f32.mxu0 %v1163_v29  ;;  %v1380_v42 = vadd.f32 %v1379_v37, %v1378_v23  ;;  %v1287_v29 = vmul.f32 %v2076_v39, %v2076_v39  ;;  %v1393_v55 = vsel %vm1305_vm1, %v1285_v56, 0.0 }
 0x174   :  { %1506 = vmatmul.mubr.f32.vlgmr.msra.gmra.mxu0 %v1162_v54  ;;  %v1291_v39 = vmul.f32 %v2303_v11, %v2303_v11  ;;  %v1407_v11 = vsel %vm1305_vm1, %v1292_v31, 0.0  ;;  %v1297_v23 = vmul.f32 %v2184_v3, %v2184_v3  ;;  %v1413_v15 = vsel %vm1305_vm1, %v1295_v28, 0.0 }
 0x175   :  { %v2328_v18 = vadd.f32 %v1167_v6, %v1166_v4  ;;  %v1382_v47 = vadd.f32 %v1381_v0, %v1380_v42  ;;  %v1397_v6 = vsel %vm1305_vm1, %v1287_v29, 0.0  ;;  %v1298_v0 = vmul.f32 %v2168_v61, %v2168_v61 }
 0x176   :  { %v1405_v36 = vsel %vm1305_vm1, %v1291_v39, 0.0  ;;  %v1417_v24 = vsel %vm1305_vm1, %v1297_v23, 0.0  ;;  %v1421_v61 = vsel %vm1305_vm1, %v1299_v41, 0.0  ;;  %v1431_v28 = vsel %vm1305_vm1, %v1304_v14, 0.0 }
 0x177   :  { %v1384_v50 = vadd.f32 %v1383_v13, %v1382_v47  ;;  %v1300_v47 = vmul.f32 %v2128_v53, %v2128_v53  ;;  %v1419_v3 = vsel %vm1305_vm1, %v1298_v0, 0.0  ;;  %v580_v53 = vsub.s32 2, %v2259_v48 }
 0x178   :  { %v1585_v41 = vand.u32 127, %v570_v40 }
 0x179   :  { %v1386_v54 = vadd.f32 %v1385_v8, %v1384_v50  ;;  %v1301_v8 = vmul.f32 %v2105_v27, %v2105_v27  ;;  %v1423_v44 = vsel %vm1305_vm1, %v1300_v47, 0.0 }
 0x17b   :  { %v1388_v57 = vadd.f32 %v1387_v5, %v1386_v54  ;;  %v1425_v1 = vsel %vm1305_vm1, %v1301_v8, 0.0 }
 0x17d   :  { %v1390_v52 = vadd.f32 %v1389_v63, %v1388_v57  ;;  %v1841_v63 = vmov 0   ;;  %v584_v57 = vsub.s32 3, %v2259_v48 }
 0x17e   :  { %1732 = vset.pattern.permute.xlu0 %v1841_v63 }
 0x17f   :  { %v1392_v62 = vadd.f32 %v1391_v59, %v1390_v52  ;;  %v581_v59 = vrot.slane %v2268_v33, %v580_v53  ;;  %v585_v52 = vrot.slane %v2268_v33, %v584_v57 }
 0x181   :  { %v1394_v4 = vadd.f32 %v1393_v55, %v1392_v62 }
 0x183   :  { %v1396_v7 = vadd.f32 %v1395_v49, %v1394_v4 }
 0x185   :  { %v1398_v12 = vadd.f32 %v1397_v6, %v1396_v7 }
 0x187   :  { %v1400_v21 = vadd.f32 %v1399_v45, %v1398_v12 }
 0x189   :  { %v1402_v17 = vadd.f32 %v1401_v2, %v1400_v21 }
 0x18b   :  { %v1404_v25 = vadd.f32 %v1403_v51, %v1402_v17 }
 0x18d   :  { %v1406_v26 = vadd.f32 %v1405_v36, %v1404_v25  ;;  %v1302_v36 = vmul.f32 %v2086_v43, %v2086_v43  ;;  %v1303_v25 = vmul.f32 %v2059_v32, %v2059_v32 }
 0x18f   :  { %v1408_v34 = vadd.f32 %v1407_v11, %v1406_v26  ;;  %v1427_v11 = vsel %vm1305_vm1, %v1302_v36, 0.0 }
 0x191   :  { %v1410_v37 = vadd.f32 %v1409_v20, %v1408_v34 }
 0x193   :  { %v1412_v35 = vadd.f32 %v1411_v16, %v1410_v37 }
 0x195   :  { %v1414_v42 = vadd.f32 %v1413_v15, %v1412_v35 }
 0x197   :  { %v1416_v13 = vadd.f32 %v1415_v9, %v1414_v42 }
 0x199   :  { %v1418_v46 = vadd.f32 %v1417_v24, %v1416_v13 }
 0x19b   :  { %v1420_v50 = vadd.f32 %v1419_v3, %v1418_v46 }
 0x19d   :  { %v1422_v5 = vadd.f32 %v1421_v61, %v1420_v50 }
 0x19f   :  { %v1424_v54 = vadd.f32 %v1423_v44, %v1422_v5  ;;  %v1842_v44 = vmov 0.0  }
 0x1a1   :  { %v1426_v56 = vadd.f32 %v1425_v1, %v1424_v54 }
 0x1a3   :  { %v1428_v26 = vadd.f32 %v1427_v11, %v1426_v56 }
 0x1a5   :  { %v944_v60 = vpop.f32.mrf.mxu1 }
 0x1a6   :  { %v945_v55 = vadd.f32 %v944_v60, %v581_v59 }
 0x1a7   :  { %v946_v29 = vpop.f32.mrf.mxu1 }
 0x1a8   :  { %v947_v38 = vadd.f32 %v946_v29, %v585_v52 }
 0x1ac   :  { %v1015_v27 = vpop.f32.mrf.mxu0 }
 0x1ad   :  { %v1016_v49 = vadd.f32 %v1015_v27, %v945_v55 }
 0x1ae   :  { %v1017_v62 = vpop.f32.mrf.mxu0 }
 0x1af   :  { %v1018_v22 = vadd.f32 %v1017_v62, %v947_v38 }
 0x1e7   :  { %v1086_v4 = vpop.f32.mrf.mxu1 }
 0x1e8   :  { %v1157_v6 = vpop.f32.mrf.mxu0  ;;  %v1087_v7 = vadd.f32 %v1086_v4, %v1016_v49 }
 0x1e9   :  { %v1088_v45 = vpop.f32.mrf.mxu1 }
 0x1ea   :  { %v1158_v10 = vadd.f32 %v1157_v6, %v1087_v7  ;;  %v1089_v12 = vadd.f32 %v1088_v45, %v1018_v22  ;;  %v1159_v39 = vpop.f32.mrf.mxu0 }
 0x1ec   :  { %v1164_v48 = vmax.f32 %v1158_v10, 0.0  ;;  %v1160_v2 = vadd.f32 %v1159_v39, %v1089_v12 }
 0x1ee   :  { %v1168_v21 = vmul.f32 %v1164_v48, %v1164_v48  ;;  %v1165_v31 = vmax.f32 %v1160_v2, 0.0 }
 0x1f0   :  { %1575 = vmatprep.mubr.f32.mxu1 %v1165_v31  ;;  %v1169_v51 = vmul.f32 %v1165_v31, %v1165_v31  ;;  %v1171_v33 = vadd.f32 %v2328_v18, %v1168_v21  ;;  %v1429_v18 = vsel %vm1305_vm1, %v1303_v25, 0.0 }
 0x1f1   :  { %1576 = vmatmul.mubr.f32.vlgmr.msra.gmra.mxu1 %v1164_v48  ;;  %v1430_v20 = vadd.f32 %v1429_v18, %v1428_v26 }
 0x1f2   :  { %v1172_v17 = vadd.f32 %v1171_v33, %v1169_v51 }
 0x1f3   :  { %v1432_v34 = vadd.f32 %v1431_v28, %v1430_v20 }
 0x1f4   :  { %1173 = vadd.xlane.f32.xlu0 %v1172_v17 }
 0x1f5   :  { %v1433_v19 = vrot.slane %v1432_v34, 4 }
 0x1f7   :  { %v1434_v16 = vadd.f32 %v1433_v19, %v1432_v34 }
 0x1f9   :  { %v1435_v37 = vrot.slane %v1434_v16, 2 }
 0x1fb   :  { %v1436_v23 = vadd.f32 %v1435_v37, %v1434_v16 }
 0x1fd   :  { %v1437_v43 = vrot.slane %v1436_v23, 1 }
 0x1ff   :  { %v1438_v15 = vadd.f32 %v1437_v43, %v1436_v23 }
 0x201   :  { %v1439_v32 = vmax.f32 %v1438_v15, 1e-24 }
 0x203   :  { %1733 = vrsqrt.f32 %v1439_v32 }
 0x20a   :  { %1588 = vperm.xlu0 %1732, %v1586_v58  }
 0x210   :  { %v1734_v46 = vpop.eup %1733 }
 0x234   :  { %v1686_v30 = vpop.f32.mrf.mxu0 }
 0x236   :  { %v1687_v9 = vpop.f32.mrf.mxu0 }
 0x237   :  { %v1688_v47 = vadd.f32 %v1687_v9, %v1686_v30 }
 0x27d   :  { %v1174_v35 = vpop.xlane.xlu0 %1173 }
 0x27e   :  { %v1175_v0 = vmax.f32 %v1174_v35, 1e-24 }
 0x280   :  { %1735 = vrsqrt.f32 %v1175_v0 }
 0x285   :  { %v1589_v13 = vpop.permute.xlu0 %1588 }
 0x286   :  { %vm1590_vm2 = vcmp.eq.s32.totalorder %v1589_v13, %v1585_v41 }
 0x287   :  { %v1652_v5 = vsel %vm1590_vm2, 1.0, %v1842_v44 }
 0x288   :  { %v1602_v53 = vsub.f32 1.0, %v1652_v5 }
 0x28d   :  { %v1736_v61 = vpop.eup %1735 }
 0x2b1   :  { %v1721_v42 = vpop.f32.mrf.mxu1 }
 0x2b3   :  { %v1722_v24 = vpop.f32.mrf.mxu1 }
 0x2b4   :  { %v1723_v3 = vadd.f32 %v1722_v24, %v1721_v42 }
 0x2b6   :  { %v1578_v8 = vadd.f32 %v1723_v3, %v1688_v47 }
 0x2b8   :  { %v1581_v50 = vmul.f32 %v1736_v61, %v1578_v8 }
 0x2ba   :  { %v1582_v1 = vmul.f32 %v1734_v46, %v1581_v50 }
 0x2bc   :  { %1583 = vst.msk [vmem:[%s2434_s5] sm:$0xff] %vm1305_vm1, %v1582_v1  ;;  %v1593_v54 = vmul.f32 %v1652_v5, %v1582_v1  ;;  %v1599_v56 = vmul.f32 30.0, %v1582_v1  ;;  %s1843_s5 = smov [#allocation8]  }
 0x2bd   :  { %s1638_s9 = sshll.u32 %s1843_s5, 4  ;;  %s1639_s9 = int_to_ptr.vmem [resolvable:$true] %s1638_s9 }
 0x2be   :  { %v1594_v40 = vsel %vm1305_vm1, %v1593_v54, 0.0  ;;  %v1600_v63 = vmul.f32 1.442695, %v1599_v56  ;;  %s1810_s10 = scalar_lea.vmem %s1639_s9, 16  ;;  %s1814_s11 = scalar_lea.vmem %s1639_s9, 32 }
 0x2bf   :  { %1595 = vadd.xlane.f32.xlu1 %v1594_v40  ;;  %p1811_p1 = scmp.ne.s32.totalorder %s1639_s9, %s1810_s10  ;;  %p1815_p2 = scmp.lt.s32.totalorder %s1639_s9, %s1639_s9 }
 0x2c0   :  { %1737 = vpow2.f32 %v1600_v63  ;;  %p1816_p3 = scmp.lt.s32.totalorder %s1814_s11, %s1810_s10 }
 0x2c2   :  { %p1817_p4 = por %p1816_p3, %p1815_p2 }
 0x2c4   :  { %p1818_p5 = pnand %p1817_p4, %p1811_p1 }
 0x2cd   :  { %v1738_v57 = vpop.eup %1737 }
 0x2ce   :  { %v1603_v60 = vmul.f32 %v1738_v57, %v1602_v53 }
 0x2d0   :  { %v1604_v59 = vsel %vm1305_vm1, %v1603_v60, 0.0 }
 0x2d1   :  { %1605 = vadd.xlane.f32.xlu1 %v1604_v59 }
 0x348   :  { %v1596_v27 = vpop.xlane.xlu1 %1595 }
 0x349   :  { %v1653_v52 = vadd.f32 -0.4, %v1596_v27 }
 0x34b   :  { %v1598_v29 = vmul.f32 30.0, %v1653_v52 }
 0x34d   :  { %v1607_v55 = vmul.f32 1.442695, %v1598_v29 }
 0x34f   :  { %1739 = vpow2.f32 %v1607_v55 }
 0x35a   :  { %v1606_v38 = vpop.xlane.xlu1 %1605 }
 0x35c   :  { %v1740_v62 = vpop.eup %1739 }
 0x35d   :  { %v1609_v49 = vadd.f32 %v1740_v62, %v1606_v38 }
 0x35f   :  { %1741 = vlog2.f32 %v1609_v49 }
 0x36c   :  { %v1742_v4 = vpop.eup %1741 }
 0x36d   :  { %v1611_v6 = vmul.f32 0.6931472, %v1742_v4 }
 0x36f   :  { %v1612_v22 = vsub.f32 %v1598_v29, %v1611_v6 }
 0x371   :  { %v1622_v7 = vrot.slane %v1612_v22, 4 }
 0x373   :  { %v1623_v45 = vadd.f32 %v1622_v7, %v1612_v22 }
 0x375   :  { %v1624_v10 = vrot.slane %v1623_v45, 2 }
 0x377   :  { %v1625_v12 = vadd.f32 %v1624_v10, %v1623_v45 }
 0x379   :  { %v1626_v39 = vrot.slane %v1625_v12, 1 }
 0x37b   :  { %v1627_v48 = vadd.f32 %v1626_v39, %v1625_v12 }
 0x37d   :  { %1629 = vst.msk [vmem:[#allocation8] sm:$0x1] %vm1628_vm3, %v1627_v48 }
 0x37e   :  { %1821 = shalt.err (!%p1818_p5)
}
 0x37f   :  { %1641 = dma.vmem_to_hbm [thread:$0]  %s1639_s9, 16, %s2435_s6, [#allocation4]  }
 0x380   :  { %1834 = dma.done.wait [#allocation4], 16  }
 0x381   :  { %1835 = vsyncadd [#allocation4], 4294967280 }
 0x382   :  { %1647 = vsyncpa [#allocation3], 1 }
 0x383   :  { %1648 = vsyncpa [#allocation6], 1 }
 0x384   :  { %1649 = vsyncpa [#allocation4], 1 }

</bundles_post_ra>
